<compile_context>
chip_gen: v7x
topology: tpu7x:2x2x1
jax: 0.10.0
libtpu: 0.0.40
codegen_flags: <defaults>
</compile_context>

<pallas_src>
import jax
import jax.numpy as jnp
from jax.experimental import pallas as pl
from jax.experimental.pallas import tpu as pltpu

# ---- small, module-consistent test configuration ----
B = 2         # batch
N = 8         # sequence length
C = 32        # hidden_size
H = 4         # num_attention_heads
Dh = C // H   # head_dim
I = 64        # intermediate_size
IPAD = 128    # intermediate_size zero-padded to a full lane width
L = 2         # num_hidden_layers
NV = 10       # number of stacked per-layer (M, C) vector params
M = B * N     # merged rows (batch folded into sublanes)
HM = H * M    # head-stacked key rows / score columns
EPS = 1e-6
SCALE = Dh ** -0.5

assert 4 * C == IPAD  # fused qkv+concat bias and padded FFN bias share a width


def _ln(x, w, b):
    m = jnp.mean(x, axis=-1, keepdims=True)
    var = jnp.mean((x - m) ** 2, axis=-1, keepdims=True)
    return (x - m) * jax.lax.rsqrt(var + EPS) * w + b


def whale_encoder_kernel(x_ref, pos_ref, vec_ref, pbuv_ref, b128_ref,
                         wqkvc_ref, wpos_ref, woc_ref, w1_ref, w2_ref,
                         fln_ref, kpmask_ref, vmask_ref, bbias_ref,
                         segmat_ref, out_ref):
    h = x_ref[...]                 # (M, C)   batch folded into rows
    pos = pos_ref[...]             # (M, C)
    kp_mask = kpmask_ref[...]      # (HM, 2C)  head block-diagonal 0/1 mask
    v_mask = vmask_ref[...]        # (HM, C)   head block-diagonal 0/1 mask
    batch_bias = bbias_ref[...]    # (M, HM)   0 / -1e30 cross-batch key mask
    seg_mat = segmat_ref[...]      # (HM, HM)  per-head-segment summation matrix

    # Static unroll over layers; all parameters stay VMEM-resident.
    for li in range(L):
        V = vec_ref[li]            # (NV, M, C) pre-broadcast vectors
        n1w, n1b = V[0], V[1]
        qnw, qnb = V[2], V[3]      # q-LN affine, pre-scaled by Dh**-0.5
        knw, knb = V[4], V[5]
        n2w, n2b = V[6], V[7]
        boc, b2 = V[8], V[9]
        Bv = b128_ref[li]          # (2, M, 128)
        b_qkvc, b1 = Bv[0], Bv[1]
        pbuv = pbuv_ref[li]        # (M, 2C)  [pos_bias_u | pos_bias_v] * scale

        residual = h
        hn = _ln(h, n1w, n1b)

        # One lane-dense (C -> 128) fused projection: [ q | k | v | hn@cw_a+cb ].
        fused = jnp.dot(hn, wqkvc_ref[li],
                        preferred_element_type=jnp.float32) + b_qkvc
        q = _ln(fused[:, 0 * C:1 * C], qnw, qnb)   # includes Dh**-0.5 (folded)
        k = _ln(fused[:, 1 * C:2 * C], knw, knb)
        v = fused[:, 2 * C:3 * C]
        cpart = fused[:, 3 * C:4 * C]              # hn @ concat_linear[:, :C] + cb

        p = jnp.dot(pos, wpos_ref[li], preferred_element_type=jnp.float32)

        # ---- head- and batch-batched relative-PE attention ----
        quv = jnp.concatenate([q, q], axis=-1) + pbuv           # (M, 2C)
        kp = jnp.concatenate([k, p], axis=-1)                   # (M, 2C)
        kp_bd = jnp.concatenate([kp] * H, axis=0) * kp_mask     # (HM, 2C)
        s = jax.lax.dot_general(quv, kp_bd, (((1,), (1,)), ((), ())),
                                preferred_element_type=jnp.float32)  # (M, HM)
        s = s + batch_bias
        # Full-row max is a valid shift for every head segment (softmax is
        # shift invariant); assumes per-row cross-head score range < ~80.
        e = jnp.exp(s - jnp.max(s, axis=-1, keepdims=True))
        seg = jnp.dot(e, seg_mat, preferred_element_type=jnp.float32)
        attn = e / seg                                          # exact reciprocal
        v_bd = jnp.concatenate([v] * H, axis=0) * v_mask        # (HM, C)
        ctx = jnp.dot(attn, v_bd, preferred_element_type=jnp.float32)  # (M, C)

        # fused linear_out + concat_linear[:, C:] projection, concat_after add.
        h2 = (cpart
              + jnp.dot(ctx, woc_ref[li], preferred_element_type=jnp.float32)
              + boc + residual)

        # feed-forward (intermediate zero-padded to 128 lanes: exact)
        h2n = _ln(h2, n2w, n2b)
        ff = jnp.maximum(
            jnp.dot(h2n, w1_ref[li], preferred_element_type=jnp.float32) + b1,
            0.0)
        h = jnp.dot(ff, w2_ref[li], preferred_element_type=jnp.float32) + b2 + h2

    F = fln_ref[...]               # (2, M, C) pre-broadcast final LN params
    out_ref[...] = _ln(h, F[0], F[1])


def prepare_fused_params(params):
    """Pre-fuse / pre-pack / pre-broadcast weights (mathematically exact,
    modulo fp summation order of the wo@cw_b fold)."""
    cw_a = params['cw'][:, :C, :]     # (L, C, C)
    cw_b = params['cw'][:, C:, :]     # (L, C, C)

    # [wq | wk | wv | cw_a] : one lane-dense (C, 128) weight per layer.
    w_qkvc = jnp.concatenate(
        [params['wq'], params['wk'], params['wv'], cw_a], axis=-1)
    b_qkvc = jnp.concatenate(
        [params['bq'][:, 0], params['bk'][:, 0],
         params['bv'][:, 0], params['cb'][:, 0]], axis=-1)          # (L, 4C)

    # linear_out folded into concat_linear's attention half.
    w_oc = jnp.einsum('lij,ljk->lik', params['wo'], cw_b)           # (L, C, C)
    b_oc = jnp.einsum('lj,ljk->lk', params['bo'][:, 0], cw_b)       # (L, C)

    # FFN padded to a full 128-lane intermediate (zero pad -> exact).
    w1p = jnp.concatenate(
        [params['w1'], jnp.zeros((L, C, IPAD - I), jnp.float32)], axis=-1)
    b1p = jnp.concatenate(
        [params['b1'][:, 0], jnp.zeros((L, IPAD - I), jnp.float32)], axis=-1)
    w2p = jnp.concatenate(
        [params['w2'], jnp.zeros((L, IPAD - I, C), jnp.float32)], axis=1)

    # Fold head_dim**-0.5 into the q-LN affine and the relative-PE biases.
    qnw_s = params['qnw'][:, 0] * SCALE
    qnb_s = params['qnb'][:, 0] * SCALE
    pbuv_s = jnp.concatenate([params['pbu'].reshape(L, C),
                              params['pbv'].reshape(L, C)], axis=-1) * SCALE

    def bc(a):   # (L, K) -> (L, M, K): no broadcast_in_dim inside the kernel
        return jnp.broadcast_to(a[:, None, :], (L, M, a.shape[-1]))

    vecs = jnp.stack([
        bc(params['n1w'][:, 0]), bc(params['n1b'][:, 0]),
        bc(qnw_s), bc(qnb_s),
        bc(params['knw'][:, 0]), bc(params['knb'][:, 0]),
        bc(params['n2w'][:, 0]), bc(params['n2b'][:, 0]),
        bc(b_oc), bc(params['b2'][:, 0]),
    ], axis=1)                                                      # (L, NV, M, C)
    pbuv_b = bc(pbuv_s)                                             # (L, M, 2C)
    b128 = jnp.stack([bc(b_qkvc), bc(b1p)], axis=1)                 # (L, 2, M, 128)
    fln = jnp.broadcast_to(
        jnp.concatenate([params['flnw'], params['flnb']], axis=0)[:, None, :],
        (2, M, C))                                                  # (2, M, C)

    # Constant masks for the head- / batch-batched attention.
    head_of_c2 = (jnp.arange(2 * C) % C) // Dh                      # (2C,)
    row_head = jnp.arange(HM) // M                                  # (HM,)
    kp_mask = (row_head[:, None] == head_of_c2[None, :]).astype(jnp.float32)
    v_mask = (row_head[:, None]
              == (jnp.arange(C) // Dh)[None, :]).astype(jnp.float32)
    qrow_b = jnp.arange(M) // N
    kcol_b = (jnp.arange(HM) % M) // N
    batch_bias = jnp.where(qrow_b[:, None] == kcol_b[None, :],
                           0.0, -1e30).astype(jnp.float32)          # (M, HM)
    j = jnp.arange(HM)
    seg_mat = ((j[:, None] // M) == (j[None, :] // M)).astype(jnp.float32)

    return (vecs, pbuv_b, b128, w_qkvc, params['wpos'], w_oc, w1p, w2p, fln,
            kp_mask, v_mask, batch_bias, seg_mat)


def _full_spec(a):
    nd = a.ndim
    return pl.BlockSpec(a.shape, lambda i, nd=nd: (0,) * nd)


def whale_audio_encoder(x, pos, params):
    (vecs, pbuv, b128, w_qkvc, wpos, w_oc, w1p, w2p, fln,
     kp_mask, v_mask, batch_bias, seg_mat) = prepare_fused_params(params)

    x_m = x.reshape(M, C)
    pos_m = pos.reshape(M, C)
    args = (x_m, pos_m, vecs, pbuv, b128, w_qkvc, wpos, w_oc, w1p, w2p, fln,
            kp_mask, v_mask, batch_bias, seg_mat)

    out = pl.pallas_call(
        whale_encoder_kernel,
        out_shape=jax.ShapeDtypeStruct((M, C), jnp.float32),
        grid=(1,),                                   # single step: B folded in
        in_specs=[_full_spec(a) for a in args],
        out_specs=pl.BlockSpec((M, C), lambda i: (0, 0)),
        compiler_params=pltpu.CompilerParams(
            dimension_semantics=("arbitrary",)),
    )(*args)
    return out.reshape(B, N, C)


# ---------------- reference (pure JAX, mirrors the PyTorch math) ----------------
def ref_forward(x, pos, params):
    def ln(t, w, b):
        m = t.mean(-1, keepdims=True)
        v = ((t - m) ** 2).mean(-1, keepdims=True)
        return (t - m) / jnp.sqrt(v + EPS) * w + b

    h = x
    for li in range(L):
        residual = h
        hn = ln(h, params['n1w'][li, 0], params['n1b'][li, 0])
        q = hn @ params['wq'][li] + params['bq'][li, 0]
        k = hn @ params['wk'][li] + params['bk'][li, 0]
        v = hn @ params['wv'][li] + params['bv'][li, 0]
        q = ln(q, params['qnw'][li, 0], params['qnb'][li, 0])
        k = ln(k, params['knw'][li, 0], params['knb'][li, 0])
        p = pos @ params['wpos'][li]
        qh = q.reshape(B, N, H, Dh); kh = k.reshape(B, N, H, Dh)
        vh = v.reshape(B, N, H, Dh); ph = p.reshape(B, N, H, Dh)
        pbu = params['pbu'][li]; pbv = params['pbv'][li]
        ac = jnp.einsum('bnhd,bmhd->bhnm', qh + pbu, kh)
        bd = jnp.einsum('bnhd,bmhd->bhnm', qh + pbv, ph)
        attn = jax.nn.softmax((ac + bd) * SCALE, axis=-1)
        ctx = jnp.einsum('bhnm,bmhd->bnhd', attn, vh).reshape(B, N, C)
        attn_out = ctx @ params['wo'][li] + params['bo'][li, 0]
        cat = jnp.concatenate([hn, attn_out], axis=-1)
        h = cat @ params['cw'][li] + params['cb'][li, 0] + residual
        residual2 = h
        h2n = ln(h, params['n2w'][li, 0], params['n2b'][li, 0])
        ff = jnp.maximum(h2n @ params['w1'][li] + params['b1'][li, 0], 0.0)
        h = ff @ params['w2'][li] + params['b2'][li, 0] + residual2
    return ln(h, params['flnw'][0], params['flnb'][0])


def make_params(key):
    keys = jax.random.split(key, 32)
    ki = iter(keys)
    nrm = lambda k, s, sc=0.02: sc * jax.random.normal(k, s, jnp.float32)
    ln_w = lambda k, s: 1.0 + 0.1 * jax.random.normal(k, s, jnp.float32)
    params = dict(
        n1w=ln_w(next(ki), (L, 1, C)), n1b=nrm(next(ki), (L, 1, C), 0.01),
        wq=nrm(next(ki), (L, C, C)), bq=nrm(next(ki), (L, 1, C), 0.01),
        wk=nrm(next(ki), (L, C, C)), bk=nrm(next(ki), (L, 1, C), 0.01),
        wv=nrm(next(ki), (L, C, C)), bv=nrm(next(ki), (L, 1, C), 0.01),
        qnw=ln_w(next(ki), (L, 1, C)), qnb=nrm(next(ki), (L, 1, C), 0.01),
        knw=ln_w(next(ki), (L, 1, C)), knb=nrm(next(ki), (L, 1, C), 0.01),
        wpos=nrm(next(ki), (L, C, C)),
        pbu=nrm(next(ki), (L, H, Dh), 0.05),
        pbv=nrm(next(ki), (L, H, Dh), 0.05),
        wo=nrm(next(ki), (L, C, C)), bo=nrm(next(ki), (L, 1, C), 0.01),
        cw=nrm(next(ki), (L, 2 * C, C)), cb=nrm(next(ki), (L, 1, C), 0.01),
        n2w=ln_w(next(ki), (L, 1, C)), n2b=nrm(next(ki), (L, 1, C), 0.01),
        w1=nrm(next(ki), (L, C, I)), b1=nrm(next(ki), (L, 1, I), 0.01),
        w2=nrm(next(ki), (L, I, C)), b2=nrm(next(ki), (L, 1, C), 0.01),
        flnw=ln_w(next(ki), (1, C)), flnb=nrm(next(ki), (1, C), 0.01),
    )
    return params


if __name__ == "__main__":
    key = jax.random.PRNGKey(0)
    kx, kpos, kparam = jax.random.split(key, 3)
    x = jax.random.normal(kx, (B, N, C), jnp.float32)      # inputs_embeds
    pos = jax.random.normal(kpos, (B, N, C), jnp.float32)  # pos_embeds
    params = make_params(kparam)

    out = jax.block_until_ready(whale_audio_encoder(x, pos, params))
    ref = jax.block_until_ready(ref_forward(x, pos, params))
    assert out.shape == (B, N, C)
    err = float(jnp.max(jnp.abs(out - ref)))
    assert jnp.allclose(out, ref, rtol=1e-3, atol=1e-3), f"max abs diff {err}"

    print("KERNEL_OK")
</pallas_src>

<mosaic_0001>
module attributes {stable_mosaic.version = 11 : i64} {
  func.func @whale_encoder_kernel(%arg0: i32, %arg1: memref<16x32xf32, #tpu.memory_space<vmem>>, %arg2: memref<16x32xf32, #tpu.memory_space<vmem>>, %arg3: memref<2x10x16x32xf32, #tpu.memory_space<vmem>>, %arg4: memref<2x16x64xf32, #tpu.memory_space<vmem>>, %arg5: memref<2x2x16x128xf32, #tpu.memory_space<vmem>>, %arg6: memref<2x32x128xf32, #tpu.memory_space<vmem>>, %arg7: memref<2x32x32xf32, #tpu.memory_space<vmem>>, %arg8: memref<2x32x32xf32, #tpu.memory_space<vmem>>, %arg9: memref<2x32x128xf32, #tpu.memory_space<vmem>>, %arg10: memref<2x128x32xf32, #tpu.memory_space<vmem>>, %arg11: memref<2x16x32xf32, #tpu.memory_space<vmem>>, %arg12: memref<64x64xf32, #tpu.memory_space<vmem>>, %arg13: memref<64x32xf32, #tpu.memory_space<vmem>>, %arg14: memref<16x64xf32, #tpu.memory_space<vmem>>, %arg15: memref<64x64xf32, #tpu.memory_space<vmem>>, %arg16: memref<16x32xf32, #tpu.memory_space<vmem>>) attributes {dimension_semantics = [#tpu.dimension_semantics<arbitrary>], iteration_bounds = array<i64: 1>, scalar_prefetch = 0 : i64, scratch_operands = 0 : i64, tpu.core_type = #tpu.core_type<tc>, window_params = [{pipeline_mode = #tpu.pipeline_mode<synchronous>, transform_indices = @transform_0, window_bounds = array<i64: 16, 32>}, {pipeline_mode = #tpu.pipeline_mode<synchronous>, transform_indices = @transform_1, window_bounds = array<i64: 16, 32>}, {pipeline_mode = #tpu.pipeline_mode<synchronous>, transform_indices = @transform_2, window_bounds = array<i64: 2, 10, 16, 32>}, {pipeline_mode = #tpu.pipeline_mode<synchronous>, transform_indices = @transform_3, window_bounds = array<i64: 2, 16, 64>}, {pipeline_mode = #tpu.pipeline_mode<synchronous>, transform_indices = @transform_4, window_bounds = array<i64: 2, 2, 16, 128>}, {pipeline_mode = #tpu.pipeline_mode<synchronous>, transform_indices = @transform_5, window_bounds = array<i64: 2, 32, 128>}, {pipeline_mode = #tpu.pipeline_mode<synchronous>, transform_indices = @transform_6, window_bounds = array<i64: 2, 32, 32>}, {pipeline_mode = #tpu.pipeline_mode<synchronous>, transform_indices = @transform_7, window_bounds = array<i64: 2, 32, 32>}, {pipeline_mode = #tpu.pipeline_mode<synchronous>, transform_indices = @transform_8, window_bounds = array<i64: 2, 32, 128>}, {pipeline_mode = #tpu.pipeline_mode<synchronous>, transform_indices = @transform_9, window_bounds = array<i64: 2, 128, 32>}, {pipeline_mode = #tpu.pipeline_mode<synchronous>, transform_indices = @transform_10, window_bounds = array<i64: 2, 16, 32>}, {pipeline_mode = #tpu.pipeline_mode<synchronous>, transform_indices = @transform_11, window_bounds = array<i64: 64, 64>}, {pipeline_mode = #tpu.pipeline_mode<synchronous>, transform_indices = @transform_12, window_bounds = array<i64: 64, 32>}, {pipeline_mode = #tpu.pipeline_mode<synchronous>, transform_indices = @transform_13, window_bounds = array<i64: 16, 64>}, {pipeline_mode = #tpu.pipeline_mode<synchronous>, transform_indices = @transform_14, window_bounds = array<i64: 64, 64>}, {pipeline_mode = #tpu.pipeline_mode<synchronous>, transform_indices = @transform_15, window_bounds = array<i64: 16, 32>}]} {
    %c0 = arith.constant 0 : index
    %c0_0 = arith.constant 0 : index
    %0 = vector.load %arg1[%c0, %c0_0] : memref<16x32xf32, #tpu.memory_space<vmem>>, vector<16x32xf32>
    %c0_1 = arith.constant 0 : index
    %c0_2 = arith.constant 0 : index
    %1 = vector.load %arg2[%c0_1, %c0_2] : memref<16x32xf32, #tpu.memory_space<vmem>>, vector<16x32xf32>
    %c0_3 = arith.constant 0 : index
    %c0_4 = arith.constant 0 : index
    %2 = vector.load %arg12[%c0_3, %c0_4] : memref<64x64xf32, #tpu.memory_space<vmem>>, vector<64x64xf32>
    %c0_5 = arith.constant 0 : index
    %c0_6 = arith.constant 0 : index
    %3 = vector.load %arg13[%c0_5, %c0_6] : memref<64x32xf32, #tpu.memory_space<vmem>>, vector<64x32xf32>
    %c0_7 = arith.constant 0 : index
    %c0_8 = arith.constant 0 : index
    %4 = vector.load %arg14[%c0_7, %c0_8] : memref<16x64xf32, #tpu.memory_space<vmem>>, vector<16x64xf32>
    %c0_9 = arith.constant 0 : index
    %c0_10 = arith.constant 0 : index
    %5 = vector.load %arg15[%c0_9, %c0_10] : memref<64x64xf32, #tpu.memory_space<vmem>>, vector<64x64xf32>
    %c0_11 = arith.constant 0 : index
    %c0_12 = arith.constant 0 : index
    %c0_13 = arith.constant 0 : index
    %c0_14 = arith.constant 0 : index
    %6 = vector.load %arg3[%c0_11, %c0_12, %c0_13, %c0_14] : memref<2x10x16x32xf32, #tpu.memory_space<vmem>>, vector<1x10x16x32xf32>
    %7 = vector.shape_cast %6 : vector<1x10x16x32xf32> to vector<10x16x32xf32>
    %8 = vector.extract_strided_slice %7 {offsets = [0, 0, 0], sizes = [1, 16, 32], strides = [1, 1, 1]} : vector<10x16x32xf32> to vector<1x16x32xf32>
    %9 = vector.shape_cast %8 : vector<1x16x32xf32> to vector<16x32xf32>
    %10 = vector.extract_strided_slice %7 {offsets = [1, 0, 0], sizes = [1, 16, 32], strides = [1, 1, 1]} : vector<10x16x32xf32> to vector<1x16x32xf32>
    %11 = vector.shape_cast %10 : vector<1x16x32xf32> to vector<16x32xf32>
    %12 = vector.extract_strided_slice %7 {offsets = [2, 0, 0], sizes = [1, 16, 32], strides = [1, 1, 1]} : vector<10x16x32xf32> to vector<1x16x32xf32>
    %13 = vector.shape_cast %12 : vector<1x16x32xf32> to vector<16x32xf32>
    %14 = vector.extract_strided_slice %7 {offsets = [3, 0, 0], sizes = [1, 16, 32], strides = [1, 1, 1]} : vector<10x16x32xf32> to vector<1x16x32xf32>
    %15 = vector.shape_cast %14 : vector<1x16x32xf32> to vector<16x32xf32>
    %16 = vector.extract_strided_slice %7 {offsets = [4, 0, 0], sizes = [1, 16, 32], strides = [1, 1, 1]} : vector<10x16x32xf32> to vector<1x16x32xf32>
    %17 = vector.shape_cast %16 : vector<1x16x32xf32> to vector<16x32xf32>
    %18 = vector.extract_strided_slice %7 {offsets = [5, 0, 0], sizes = [1, 16, 32], strides = [1, 1, 1]} : vector<10x16x32xf32> to vector<1x16x32xf32>
    %19 = vector.shape_cast %18 : vector<1x16x32xf32> to vector<16x32xf32>
    %20 = vector.extract_strided_slice %7 {offsets = [6, 0, 0], sizes = [1, 16, 32], strides = [1, 1, 1]} : vector<10x16x32xf32> to vector<1x16x32xf32>
    %21 = vector.shape_cast %20 : vector<1x16x32xf32> to vector<16x32xf32>
    %22 = vector.extract_strided_slice %7 {offsets = [7, 0, 0], sizes = [1, 16, 32], strides = [1, 1, 1]} : vector<10x16x32xf32> to vector<1x16x32xf32>
    %23 = vector.shape_cast %22 : vector<1x16x32xf32> to vector<16x32xf32>
    %24 = vector.extract_strided_slice %7 {offsets = [8, 0, 0], sizes = [1, 16, 32], strides = [1, 1, 1]} : vector<10x16x32xf32> to vector<1x16x32xf32>
    %25 = vector.shape_cast %24 : vector<1x16x32xf32> to vector<16x32xf32>
    %26 = vector.extract_strided_slice %7 {offsets = [9, 0, 0], sizes = [1, 16, 32], strides = [1, 1, 1]} : vector<10x16x32xf32> to vector<1x16x32xf32>
    %27 = vector.shape_cast %26 : vector<1x16x32xf32> to vector<16x32xf32>
    %c0_15 = arith.constant 0 : index
    %c0_16 = arith.constant 0 : index
    %c0_17 = arith.constant 0 : index
    %c0_18 = arith.constant 0 : index
    %28 = vector.load %arg5[%c0_15, %c0_16, %c0_17, %c0_18] : memref<2x2x16x128xf32, #tpu.memory_space<vmem>>, vector<1x2x16x128xf32>
    %29 = vector.shape_cast %28 : vector<1x2x16x128xf32> to vector<2x16x128xf32>
    %30 = vector.extract_strided_slice %29 {offsets = [0, 0, 0], sizes = [1, 16, 128], strides = [1, 1, 1]} : vector<2x16x128xf32> to vector<1x16x128xf32>
    %31 = vector.shape_cast %30 : vector<1x16x128xf32> to vector<16x128xf32>
    %32 = vector.extract_strided_slice %29 {offsets = [1, 0, 0], sizes = [1, 16, 128], strides = [1, 1, 1]} : vector<2x16x128xf32> to vector<1x16x128xf32>
    %33 = vector.shape_cast %32 : vector<1x16x128xf32> to vector<16x128xf32>
    %c0_19 = arith.constant 0 : index
    %c0_20 = arith.constant 0 : index
    %c0_21 = arith.constant 0 : index
    %34 = vector.load %arg4[%c0_19, %c0_20, %c0_21] : memref<2x16x64xf32, #tpu.memory_space<vmem>>, vector<1x16x64xf32>
    %35 = vector.shape_cast %34 : vector<1x16x64xf32> to vector<16x64xf32>
    %cst = arith.constant dense<0.000000e+00> : vector<16xf32>
    %36 = vector.multi_reduction <add>, %0, %cst [1] : vector<16x32xf32> to vector<16xf32>
    %37 = vector.shape_cast %36 : vector<16xf32> to vector<16x1xf32>
    %cst_22 = arith.constant 3.200000e+01 : f32
    %38 = vector.broadcast %cst_22 : f32 to vector<16x1xf32>
    %39 = arith.divf %37, %38 : vector<16x1xf32>
    %40 = vector.broadcast %39 : vector<16x1xf32> to vector<16x32xf32>
    %41 = arith.subf %0, %40 : vector<16x32xf32>
    %42 = arith.mulf %41, %41 : vector<16x32xf32>
    %cst_23 = arith.constant dense<0.000000e+00> : vector<16xf32>
    %43 = vector.multi_reduction <add>, %42, %cst_23 [1] : vector<16x32xf32> to vector<16xf32>
    %44 = vector.shape_cast %43 : vector<16xf32> to vector<16x1xf32>
    %cst_24 = arith.constant 3.200000e+01 : f32
    %45 = vector.broadcast %cst_24 : f32 to vector<16x1xf32>
    %46 = arith.divf %44, %45 : vector<16x1xf32>
    %47 = vector.broadcast %39 : vector<16x1xf32> to vector<16x32xf32>
    %48 = arith.subf %0, %47 : vector<16x32xf32>
    %cst_25 = arith.constant 9.99999997E-7 : f32
    %49 = vector.broadcast %cst_25 : f32 to vector<16x1xf32>
    %50 = arith.addf %46, %49 : vector<16x1xf32>
    %51 = math.rsqrt %50 : vector<16x1xf32>
    %52 = vector.broadcast %51 : vector<16x1xf32> to vector<16x32xf32>
    %53 = arith.mulf %48, %52 : vector<16x32xf32>
    %54 = arith.mulf %53, %9 : vector<16x32xf32>
    %55 = arith.addf %54, %11 : vector<16x32xf32>
    %c0_26 = arith.constant 0 : index
    %c0_27 = arith.constant 0 : index
    %c0_28 = arith.constant 0 : index
    %56 = vector.load %arg6[%c0_26, %c0_27, %c0_28] : memref<2x32x128xf32, #tpu.memory_space<vmem>>, vector<1x32x128xf32>
    %57 = vector.shape_cast %56 : vector<1x32x128xf32> to vector<32x128xf32>
    %cst_29 = arith.constant dense<0.000000e+00> : vector<16x128xf32>
    %58 = tpu.matmul %55, %57, %cst_29 {dimension_numbers = #tpu.dot_dimension_numbers<[1], [0], [0], [1], [0, 0, 1, 1], [], []>} : vector<16x32xf32>, vector<32x128xf32>, vector<16x128xf32> -> vector<16x128xf32>
    %59 = arith.addf %58, %31 : vector<16x128xf32>
    %60 = vector.extract_strided_slice %59 {offsets = [0, 0], sizes = [16, 32], strides = [1, 1]} : vector<16x128xf32> to vector<16x32xf32>
    %cst_30 = arith.constant dense<0.000000e+00> : vector<16xf32>
    %61 = vector.multi_reduction <add>, %60, %cst_30 [1] : vector<16x32xf32> to vector<16xf32>
    %62 = vector.shape_cast %61 : vector<16xf32> to vector<16x1xf32>
    %cst_31 = arith.constant 3.200000e+01 : f32
    %63 = vector.broadcast %cst_31 : f32 to vector<16x1xf32>
    %64 = arith.divf %62, %63 : vector<16x1xf32>
    %65 = vector.broadcast %64 : vector<16x1xf32> to vector<16x32xf32>
    %66 = arith.subf %60, %65 : vector<16x32xf32>
    %67 = arith.mulf %66, %66 : vector<16x32xf32>
    %cst_32 = arith.constant dense<0.000000e+00> : vector<16xf32>
    %68 = vector.multi_reduction <add>, %67, %cst_32 [1] : vector<16x32xf32> to vector<16xf32>
    %69 = vector.shape_cast %68 : vector<16xf32> to vector<16x1xf32>
    %cst_33 = arith.constant 3.200000e+01 : f32
    %70 = vector.broadcast %cst_33 : f32 to vector<16x1xf32>
    %71 = arith.divf %69, %70 : vector<16x1xf32>
    %72 = vector.broadcast %64 : vector<16x1xf32> to vector<16x32xf32>
    %73 = arith.subf %60, %72 : vector<16x32xf32>
    %cst_34 = arith.constant 9.99999997E-7 : f32
    %74 = vector.broadcast %cst_34 : f32 to vector<16x1xf32>
    %75 = arith.addf %71, %74 : vector<16x1xf32>
    %76 = math.rsqrt %75 : vector<16x1xf32>
    %77 = vector.broadcast %76 : vector<16x1xf32> to vector<16x32xf32>
    %78 = arith.mulf %73, %77 : vector<16x32xf32>
    %79 = arith.mulf %78, %13 : vector<16x32xf32>
    %80 = arith.addf %79, %15 : vector<16x32xf32>
    %81 = vector.extract_strided_slice %59 {offsets = [0, 32], sizes = [16, 32], strides = [1, 1]} : vector<16x128xf32> to vector<16x32xf32>
    %cst_35 = arith.constant dense<0.000000e+00> : vector<16xf32>
    %82 = vector.multi_reduction <add>, %81, %cst_35 [1] : vector<16x32xf32> to vector<16xf32>
    %83 = vector.shape_cast %82 : vector<16xf32> to vector<16x1xf32>
    %cst_36 = arith.constant 3.200000e+01 : f32
    %84 = vector.broadcast %cst_36 : f32 to vector<16x1xf32>
    %85 = arith.divf %83, %84 : vector<16x1xf32>
    %86 = vector.broadcast %85 : vector<16x1xf32> to vector<16x32xf32>
    %87 = arith.subf %81, %86 : vector<16x32xf32>
    %88 = arith.mulf %87, %87 : vector<16x32xf32>
    %cst_37 = arith.constant dense<0.000000e+00> : vector<16xf32>
    %89 = vector.multi_reduction <add>, %88, %cst_37 [1] : vector<16x32xf32> to vector<16xf32>
    %90 = vector.shape_cast %89 : vector<16xf32> to vector<16x1xf32>
    %cst_38 = arith.constant 3.200000e+01 : f32
    %91 = vector.broadcast %cst_38 : f32 to vector<16x1xf32>
    %92 = arith.divf %90, %91 : vector<16x1xf32>
    %93 = vector.broadcast %85 : vector<16x1xf32> to vector<16x32xf32>
    %94 = arith.subf %81, %93 : vector<16x32xf32>
    %cst_39 = arith.constant 9.99999997E-7 : f32
    %95 = vector.broadcast %cst_39 : f32 to vector<16x1xf32>
    %96 = arith.addf %92, %95 : vector<16x1xf32>
    %97 = math.rsqrt %96 : vector<16x1xf32>
    %98 = vector.broadcast %97 : vector<16x1xf32> to vector<16x32xf32>
    %99 = arith.mulf %94, %98 : vector<16x32xf32>
    %100 = arith.mulf %99, %17 : vector<16x32xf32>
    %101 = arith.addf %100, %19 : vector<16x32xf32>
    %102 = vector.extract_strided_slice %59 {offsets = [0, 64], sizes = [16, 32], strides = [1, 1]} : vector<16x128xf32> to vector<16x32xf32>
    %103 = vector.extract_strided_slice %59 {offsets = [0, 96], sizes = [16, 32], strides = [1, 1]} : vector<16x128xf32> to vector<16x32xf32>
    %c0_40 = arith.constant 0 : index
    %c0_41 = arith.constant 0 : index
    %c0_42 = arith.constant 0 : index
    %104 = vector.load %arg7[%c0_40, %c0_41, %c0_42] : memref<2x32x32xf32, #tpu.memory_space<vmem>>, vector<1x32x32xf32>
    %105 = vector.shape_cast %104 : vector<1x32x32xf32> to vector<32x32xf32>
    %cst_43 = arith.constant dense<0.000000e+00> : vector<16x32xf32>
    %106 = tpu.matmul %1, %105, %cst_43 {dimension_numbers = #tpu.dot_dimension_numbers<[1], [0], [0], [1], [0, 0, 1, 1], [], []>} : vector<16x32xf32>, vector<32x32xf32>, vector<16x32xf32> -> vector<16x32xf32>
    %107 = tpu.concatenate %80, %80 in 1 : vector<16x32xf32>, vector<16x32xf32> -> vector<16x64xf32>
    %108 = arith.addf %107, %35 : vector<16x64xf32>
    %109 = tpu.concatenate %101, %106 in 1 : vector<16x32xf32>, vector<16x32xf32> -> vector<16x64xf32>
    %110 = tpu.concatenate %109, %109, %109, %109 in 0 : vector<16x64xf32>, vector<16x64xf32>, vector<16x64xf32>, vector<16x64xf32> -> vector<64x64xf32>
    %111 = arith.mulf %110, %2 : vector<64x64xf32>
    %cst_44 = arith.constant dense<0.000000e+00> : vector<16x64xf32>
    %112 = tpu.matmul %108, %111, %cst_44 {dimension_numbers = #tpu.dot_dimension_numbers<[1], [1], [0], [0], [0, 0, 1, 0], [], []>} : vector<16x64xf32>, vector<64x64xf32>, vector<16x64xf32> -> vector<16x64xf32>
    %113 = arith.addf %112, %4 : vector<16x64xf32>
    %cst_45 = arith.constant dense<0xFF800000> : vector<16xf32>
    %114 = vector.multi_reduction <maximumf>, %113, %cst_45 [1] : vector<16x64xf32> to vector<16xf32>
    %115 = vector.shape_cast %114 : vector<16xf32> to vector<16x1xf32>
    %116 = vector.broadcast %115 : vector<16x1xf32> to vector<16x64xf32>
    %117 = arith.subf %113, %116 : vector<16x64xf32>
    %118 = math.exp %117 : vector<16x64xf32>
    %cst_46 = arith.constant dense<0.000000e+00> : vector<16x64xf32>
    %119 = tpu.matmul %118, %5, %cst_46 {dimension_numbers = #tpu.dot_dimension_numbers<[1], [0], [0], [1], [0, 0, 1, 1], [], []>} : vector<16x64xf32>, vector<64x64xf32>, vector<16x64xf32> -> vector<16x64xf32>
    %120 = arith.divf %118, %119 : vector<16x64xf32>
    %121 = tpu.concatenate %102, %102, %102, %102 in 0 : vector<16x32xf32>, vector<16x32xf32>, vector<16x32xf32>, vector<16x32xf32> -> vector<64x32xf32>
    %122 = arith.mulf %121, %3 : vector<64x32xf32>
    %cst_47 = arith.constant dense<0.000000e+00> : vector<16x32xf32>
    %123 = tpu.matmul %120, %122, %cst_47 {dimension_numbers = #tpu.dot_dimension_numbers<[1], [0], [0], [1], [0, 0, 1, 1], [], []>} : vector<16x64xf32>, vector<64x32xf32>, vector<16x32xf32> -> vector<16x32xf32>
    %c0_48 = arith.constant 0 : index
    %c0_49 = arith.constant 0 : index
    %c0_50 = arith.constant 0 : index
    %124 = vector.load %arg8[%c0_48, %c0_49, %c0_50] : memref<2x32x32xf32, #tpu.memory_space<vmem>>, vector<1x32x32xf32>
    %125 = vector.shape_cast %124 : vector<1x32x32xf32> to vector<32x32xf32>
    %cst_51 = arith.constant dense<0.000000e+00> : vector<16x32xf32>
    %126 = tpu.matmul %123, %125, %cst_51 {dimension_numbers = #tpu.dot_dimension_numbers<[1], [0], [0], [1], [0, 0, 1, 1], [], []>} : vector<16x32xf32>, vector<32x32xf32>, vector<16x32xf32> -> vector<16x32xf32>
    %127 = arith.addf %103, %126 : vector<16x32xf32>
    %128 = arith.addf %127, %25 : vector<16x32xf32>
    %129 = arith.addf %128, %0 : vector<16x32xf32>
    %cst_52 = arith.constant dense<0.000000e+00> : vector<16xf32>
    %130 = vector.multi_reduction <add>, %129, %cst_52 [1] : vector<16x32xf32> to vector<16xf32>
    %131 = vector.shape_cast %130 : vector<16xf32> to vector<16x1xf32>
    %cst_53 = arith.constant 3.200000e+01 : f32
    %132 = vector.broadcast %cst_53 : f32 to vector<16x1xf32>
    %133 = arith.divf %131, %132 : vector<16x1xf32>
    %134 = vector.broadcast %133 : vector<16x1xf32> to vector<16x32xf32>
    %135 = arith.subf %129, %134 : vector<16x32xf32>
    %136 = arith.mulf %135, %135 : vector<16x32xf32>
    %cst_54 = arith.constant dense<0.000000e+00> : vector<16xf32>
    %137 = vector.multi_reduction <add>, %136, %cst_54 [1] : vector<16x32xf32> to vector<16xf32>
    %138 = vector.shape_cast %137 : vector<16xf32> to vector<16x1xf32>
    %cst_55 = arith.constant 3.200000e+01 : f32
    %139 = vector.broadcast %cst_55 : f32 to vector<16x1xf32>
    %140 = arith.divf %138, %139 : vector<16x1xf32>
    %141 = vector.broadcast %133 : vector<16x1xf32> to vector<16x32xf32>
    %142 = arith.subf %129, %141 : vector<16x32xf32>
    %cst_56 = arith.constant 9.99999997E-7 : f32
    %143 = vector.broadcast %cst_56 : f32 to vector<16x1xf32>
    %144 = arith.addf %140, %143 : vector<16x1xf32>
    %145 = math.rsqrt %144 : vector<16x1xf32>
    %146 = vector.broadcast %145 : vector<16x1xf32> to vector<16x32xf32>
    %147 = arith.mulf %142, %146 : vector<16x32xf32>
    %148 = arith.mulf %147, %21 : vector<16x32xf32>
    %149 = arith.addf %148, %23 : vector<16x32xf32>
    %c0_57 = arith.constant 0 : index
    %c0_58 = arith.constant 0 : index
    %c0_59 = arith.constant 0 : index
    %150 = vector.load %arg9[%c0_57, %c0_58, %c0_59] : memref<2x32x128xf32, #tpu.memory_space<vmem>>, vector<1x32x128xf32>
    %151 = vector.shape_cast %150 : vector<1x32x128xf32> to vector<32x128xf32>
    %cst_60 = arith.constant dense<0.000000e+00> : vector<16x128xf32>
    %152 = tpu.matmul %149, %151, %cst_60 {dimension_numbers = #tpu.dot_dimension_numbers<[1], [0], [0], [1], [0, 0, 1, 1], [], []>} : vector<16x32xf32>, vector<32x128xf32>, vector<16x128xf32> -> vector<16x128xf32>
    %153 = arith.addf %152, %33 : vector<16x128xf32>
    %cst_61 = arith.constant 0.000000e+00 : f32
    %154 = vector.broadcast %cst_61 : f32 to vector<16x128xf32>
    %155 = arith.maximumf %153, %154 : vector<16x128xf32>
    %c0_62 = arith.constant 0 : index
    %c0_63 = arith.constant 0 : index
    %c0_64 = arith.constant 0 : index
    %156 = vector.load %arg10[%c0_62, %c0_63, %c0_64] : memref<2x128x32xf32, #tpu.memory_space<vmem>>, vector<1x128x32xf32>
    %157 = vector.shape_cast %156 : vector<1x128x32xf32> to vector<128x32xf32>
    %cst_65 = arith.constant dense<0.000000e+00> : vector<16x32xf32>
    %158 = tpu.matmul %155, %157, %cst_65 {dimension_numbers = #tpu.dot_dimension_numbers<[1], [0], [0], [1], [0, 0, 1, 1], [], []>} : vector<16x128xf32>, vector<128x32xf32>, vector<16x32xf32> -> vector<16x32xf32>
    %159 = arith.addf %158, %27 : vector<16x32xf32>
    %160 = arith.addf %159, %129 : vector<16x32xf32>
    %c1 = arith.constant 1 : index
    %c0_66 = arith.constant 0 : index
    %c0_67 = arith.constant 0 : index
    %c0_68 = arith.constant 0 : index
    %161 = vector.load %arg3[%c1, %c0_66, %c0_67, %c0_68] : memref<2x10x16x32xf32, #tpu.memory_space<vmem>>, vector<1x10x16x32xf32>
    %162 = vector.shape_cast %161 : vector<1x10x16x32xf32> to vector<10x16x32xf32>
    %163 = vector.extract_strided_slice %162 {offsets = [0, 0, 0], sizes = [1, 16, 32], strides = [1, 1, 1]} : vector<10x16x32xf32> to vector<1x16x32xf32>
    %164 = vector.shape_cast %163 : vector<1x16x32xf32> to vector<16x32xf32>
    %165 = vector.extract_strided_slice %162 {offsets = [1, 0, 0], sizes = [1, 16, 32], strides = [1, 1, 1]} : vector<10x16x32xf32> to vector<1x16x32xf32>
    %166 = vector.shape_cast %165 : vector<1x16x32xf32> to vector<16x32xf32>
    %167 = vector.extract_strided_slice %162 {offsets = [2, 0, 0], sizes = [1, 16, 32], strides = [1, 1, 1]} : vector<10x16x32xf32> to vector<1x16x32xf32>
    %168 = vector.shape_cast %167 : vector<1x16x32xf32> to vector<16x32xf32>
    %169 = vector.extract_strided_slice %162 {offsets = [3, 0, 0], sizes = [1, 16, 32], strides = [1, 1, 1]} : vector<10x16x32xf32> to vector<1x16x32xf32>
    %170 = vector.shape_cast %169 : vector<1x16x32xf32> to vector<16x32xf32>
    %171 = vector.extract_strided_slice %162 {offsets = [4, 0, 0], sizes = [1, 16, 32], strides = [1, 1, 1]} : vector<10x16x32xf32> to vector<1x16x32xf32>
    %172 = vector.shape_cast %171 : vector<1x16x32xf32> to vector<16x32xf32>
    %173 = vector.extract_strided_slice %162 {offsets = [5, 0, 0], sizes = [1, 16, 32], strides = [1, 1, 1]} : vector<10x16x32xf32> to vector<1x16x32xf32>
    %174 = vector.shape_cast %173 : vector<1x16x32xf32> to vector<16x32xf32>
    %175 = vector.extract_strided_slice %162 {offsets = [6, 0, 0], sizes = [1, 16, 32], strides = [1, 1, 1]} : vector<10x16x32xf32> to vector<1x16x32xf32>
    %176 = vector.shape_cast %175 : vector<1x16x32xf32> to vector<16x32xf32>
    %177 = vector.extract_strided_slice %162 {offsets = [7, 0, 0], sizes = [1, 16, 32], strides = [1, 1, 1]} : vector<10x16x32xf32> to vector<1x16x32xf32>
    %178 = vector.shape_cast %177 : vector<1x16x32xf32> to vector<16x32xf32>
    %179 = vector.extract_strided_slice %162 {offsets = [8, 0, 0], sizes = [1, 16, 32], strides = [1, 1, 1]} : vector<10x16x32xf32> to vector<1x16x32xf32>
    %180 = vector.shape_cast %179 : vector<1x16x32xf32> to vector<16x32xf32>
    %181 = vector.extract_strided_slice %162 {offsets = [9, 0, 0], sizes = [1, 16, 32], strides = [1, 1, 1]} : vector<10x16x32xf32> to vector<1x16x32xf32>
    %182 = vector.shape_cast %181 : vector<1x16x32xf32> to vector<16x32xf32>
    %c1_69 = arith.constant 1 : index
    %c0_70 = arith.constant 0 : index
    %c0_71 = arith.constant 0 : index
    %c0_72 = arith.constant 0 : index
    %183 = vector.load %arg5[%c1_69, %c0_70, %c0_71, %c0_72] : memref<2x2x16x128xf32, #tpu.memory_space<vmem>>, vector<1x2x16x128xf32>
    %184 = vector.shape_cast %183 : vector<1x2x16x128xf32> to vector<2x16x128xf32>
    %185 = vector.extract_strided_slice %184 {offsets = [0, 0, 0], sizes = [1, 16, 128], strides = [1, 1, 1]} : vector<2x16x128xf32> to vector<1x16x128xf32>
    %186 = vector.shape_cast %185 : vector<1x16x128xf32> to vector<16x128xf32>
    %187 = vector.extract_strided_slice %184 {offsets = [1, 0, 0], sizes = [1, 16, 128], strides = [1, 1, 1]} : vector<2x16x128xf32> to vector<1x16x128xf32>
    %188 = vector.shape_cast %187 : vector<1x16x128xf32> to vector<16x128xf32>
    %c1_73 = arith.constant 1 : index
    %c0_74 = arith.constant 0 : index
    %c0_75 = arith.constant 0 : index
    %189 = vector.load %arg4[%c1_73, %c0_74, %c0_75] : memref<2x16x64xf32, #tpu.memory_space<vmem>>, vector<1x16x64xf32>
    %190 = vector.shape_cast %189 : vector<1x16x64xf32> to vector<16x64xf32>
    %cst_76 = arith.constant dense<0.000000e+00> : vector<16xf32>
    %191 = vector.multi_reduction <add>, %160, %cst_76 [1] : vector<16x32xf32> to vector<16xf32>
    %192 = vector.shape_cast %191 : vector<16xf32> to vector<16x1xf32>
    %cst_77 = arith.constant 3.200000e+01 : f32
    %193 = vector.broadcast %cst_77 : f32 to vector<16x1xf32>
    %194 = arith.divf %192, %193 : vector<16x1xf32>
    %195 = vector.broadcast %194 : vector<16x1xf32> to vector<16x32xf32>
    %196 = arith.subf %160, %195 : vector<16x32xf32>
    %197 = arith.mulf %196, %196 : vector<16x32xf32>
    %cst_78 = arith.constant dense<0.000000e+00> : vector<16xf32>
    %198 = vector.multi_reduction <add>, %197, %cst_78 [1] : vector<16x32xf32> to vector<16xf32>
    %199 = vector.shape_cast %198 : vector<16xf32> to vector<16x1xf32>
    %cst_79 = arith.constant 3.200000e+01 : f32
    %200 = vector.broadcast %cst_79 : f32 to vector<16x1xf32>
    %201 = arith.divf %199, %200 : vector<16x1xf32>
    %202 = vector.broadcast %194 : vector<16x1xf32> to vector<16x32xf32>
    %203 = arith.subf %160, %202 : vector<16x32xf32>
    %cst_80 = arith.constant 9.99999997E-7 : f32
    %204 = vector.broadcast %cst_80 : f32 to vector<16x1xf32>
    %205 = arith.addf %201, %204 : vector<16x1xf32>
    %206 = math.rsqrt %205 : vector<16x1xf32>
    %207 = vector.broadcast %206 : vector<16x1xf32> to vector<16x32xf32>
    %208 = arith.mulf %203, %207 : vector<16x32xf32>
    %209 = arith.mulf %208, %164 : vector<16x32xf32>
    %210 = arith.addf %209, %166 : vector<16x32xf32>
    %c1_81 = arith.constant 1 : index
    %c0_82 = arith.constant 0 : index
    %c0_83 = arith.constant 0 : index
    %211 = vector.load %arg6[%c1_81, %c0_82, %c0_83] : memref<2x32x128xf32, #tpu.memory_space<vmem>>, vector<1x32x128xf32>
    %212 = vector.shape_cast %211 : vector<1x32x128xf32> to vector<32x128xf32>
    %cst_84 = arith.constant dense<0.000000e+00> : vector<16x128xf32>
    %213 = tpu.matmul %210, %212, %cst_84 {dimension_numbers = #tpu.dot_dimension_numbers<[1], [0], [0], [1], [0, 0, 1, 1], [], []>} : vector<16x32xf32>, vector<32x128xf32>, vector<16x128xf32> -> vector<16x128xf32>
    %214 = arith.addf %213, %186 : vector<16x128xf32>
    %215 = vector.extract_strided_slice %214 {offsets = [0, 0], sizes = [16, 32], strides = [1, 1]} : vector<16x128xf32> to vector<16x32xf32>
    %cst_85 = arith.constant dense<0.000000e+00> : vector<16xf32>
    %216 = vector.multi_reduction <add>, %215, %cst_85 [1] : vector<16x32xf32> to vector<16xf32>
    %217 = vector.shape_cast %216 : vector<16xf32> to vector<16x1xf32>
    %cst_86 = arith.constant 3.200000e+01 : f32
    %218 = vector.broadcast %cst_86 : f32 to vector<16x1xf32>
    %219 = arith.divf %217, %218 : vector<16x1xf32>
    %220 = vector.broadcast %219 : vector<16x1xf32> to vector<16x32xf32>
    %221 = arith.subf %215, %220 : vector<16x32xf32>
    %222 = arith.mulf %221, %221 : vector<16x32xf32>
    %cst_87 = arith.constant dense<0.000000e+00> : vector<16xf32>
    %223 = vector.multi_reduction <add>, %222, %cst_87 [1] : vector<16x32xf32> to vector<16xf32>
    %224 = vector.shape_cast %223 : vector<16xf32> to vector<16x1xf32>
    %cst_88 = arith.constant 3.200000e+01 : f32
    %225 = vector.broadcast %cst_88 : f32 to vector<16x1xf32>
    %226 = arith.divf %224, %225 : vector<16x1xf32>
    %227 = vector.broadcast %219 : vector<16x1xf32> to vector<16x32xf32>
    %228 = arith.subf %215, %227 : vector<16x32xf32>
    %cst_89 = arith.constant 9.99999997E-7 : f32
    %229 = vector.broadcast %cst_89 : f32 to vector<16x1xf32>
    %230 = arith.addf %226, %229 : vector<16x1xf32>
    %231 = math.rsqrt %230 : vector<16x1xf32>
    %232 = vector.broadcast %231 : vector<16x1xf32> to vector<16x32xf32>
    %233 = arith.mulf %228, %232 : vector<16x32xf32>
    %234 = arith.mulf %233, %168 : vector<16x32xf32>
    %235 = arith.addf %234, %170 : vector<16x32xf32>
    %236 = vector.extract_strided_slice %214 {offsets = [0, 32], sizes = [16, 32], strides = [1, 1]} : vector<16x128xf32> to vector<16x32xf32>
    %cst_90 = arith.constant dense<0.000000e+00> : vector<16xf32>
    %237 = vector.multi_reduction <add>, %236, %cst_90 [1] : vector<16x32xf32> to vector<16xf32>
    %238 = vector.shape_cast %237 : vector<16xf32> to vector<16x1xf32>
    %cst_91 = arith.constant 3.200000e+01 : f32
    %239 = vector.broadcast %cst_91 : f32 to vector<16x1xf32>
    %240 = arith.divf %238, %239 : vector<16x1xf32>
    %241 = vector.broadcast %240 : vector<16x1xf32> to vector<16x32xf32>
    %242 = arith.subf %236, %241 : vector<16x32xf32>
    %243 = arith.mulf %242, %242 : vector<16x32xf32>
    %cst_92 = arith.constant dense<0.000000e+00> : vector<16xf32>
    %244 = vector.multi_reduction <add>, %243, %cst_92 [1] : vector<16x32xf32> to vector<16xf32>
    %245 = vector.shape_cast %244 : vector<16xf32> to vector<16x1xf32>
    %cst_93 = arith.constant 3.200000e+01 : f32
    %246 = vector.broadcast %cst_93 : f32 to vector<16x1xf32>
    %247 = arith.divf %245, %246 : vector<16x1xf32>
    %248 = vector.broadcast %240 : vector<16x1xf32> to vector<16x32xf32>
    %249 = arith.subf %236, %248 : vector<16x32xf32>
    %cst_94 = arith.constant 9.99999997E-7 : f32
    %250 = vector.broadcast %cst_94 : f32 to vector<16x1xf32>
    %251 = arith.addf %247, %250 : vector<16x1xf32>
    %252 = math.rsqrt %251 : vector<16x1xf32>
    %253 = vector.broadcast %252 : vector<16x1xf32> to vector<16x32xf32>
    %254 = arith.mulf %249, %253 : vector<16x32xf32>
    %255 = arith.mulf %254, %172 : vector<16x32xf32>
    %256 = arith.addf %255, %174 : vector<16x32xf32>
    %257 = vector.extract_strided_slice %214 {offsets = [0, 64], sizes = [16, 32], strides = [1, 1]} : vector<16x128xf32> to vector<16x32xf32>
    %258 = vector.extract_strided_slice %214 {offsets = [0, 96], sizes = [16, 32], strides = [1, 1]} : vector<16x128xf32> to vector<16x32xf32>
    %c1_95 = arith.constant 1 : index
    %c0_96 = arith.constant 0 : index
    %c0_97 = arith.constant 0 : index
    %259 = vector.load %arg7[%c1_95, %c0_96, %c0_97] : memref<2x32x32xf32, #tpu.memory_space<vmem>>, vector<1x32x32xf32>
    %260 = vector.shape_cast %259 : vector<1x32x32xf32> to vector<32x32xf32>
    %cst_98 = arith.constant dense<0.000000e+00> : vector<16x32xf32>
    %261 = tpu.matmul %1, %260, %cst_98 {dimension_numbers = #tpu.dot_dimension_numbers<[1], [0], [0], [1], [0, 0, 1, 1], [], []>} : vector<16x32xf32>, vector<32x32xf32>, vector<16x32xf32> -> vector<16x32xf32>
    %262 = tpu.concatenate %235, %235 in 1 : vector<16x32xf32>, vector<16x32xf32> -> vector<16x64xf32>
    %263 = arith.addf %262, %190 : vector<16x64xf32>
    %264 = tpu.concatenate %256, %261 in 1 : vector<16x32xf32>, vector<16x32xf32> -> vector<16x64xf32>
    %265 = tpu.concatenate %264, %264, %264, %264 in 0 : vector<16x64xf32>, vector<16x64xf32>, vector<16x64xf32>, vector<16x64xf32> -> vector<64x64xf32>
    %266 = arith.mulf %265, %2 : vector<64x64xf32>
    %cst_99 = arith.constant dense<0.000000e+00> : vector<16x64xf32>
    %267 = tpu.matmul %263, %266, %cst_99 {dimension_numbers = #tpu.dot_dimension_numbers<[1], [1], [0], [0], [0, 0, 1, 0], [], []>} : vector<16x64xf32>, vector<64x64xf32>, vector<16x64xf32> -> vector<16x64xf32>
    %268 = arith.addf %267, %4 : vector<16x64xf32>
    %cst_100 = arith.constant dense<0xFF800000> : vector<16xf32>
    %269 = vector.multi_reduction <maximumf>, %268, %cst_100 [1] : vector<16x64xf32> to vector<16xf32>
    %270 = vector.shape_cast %269 : vector<16xf32> to vector<16x1xf32>
    %271 = vector.broadcast %270 : vector<16x1xf32> to vector<16x64xf32>
    %272 = arith.subf %268, %271 : vector<16x64xf32>
    %273 = math.exp %272 : vector<16x64xf32>
    %cst_101 = arith.constant dense<0.000000e+00> : vector<16x64xf32>
    %274 = tpu.matmul %273, %5, %cst_101 {dimension_numbers = #tpu.dot_dimension_numbers<[1], [0], [0], [1], [0, 0, 1, 1], [], []>} : vector<16x64xf32>, vector<64x64xf32>, vector<16x64xf32> -> vector<16x64xf32>
    %275 = arith.divf %273, %274 : vector<16x64xf32>
    %276 = tpu.concatenate %257, %257, %257, %257 in 0 : vector<16x32xf32>, vector<16x32xf32>, vector<16x32xf32>, vector<16x32xf32> -> vector<64x32xf32>
    %277 = arith.mulf %276, %3 : vector<64x32xf32>
    %cst_102 = arith.constant dense<0.000000e+00> : vector<16x32xf32>
    %278 = tpu.matmul %275, %277, %cst_102 {dimension_numbers = #tpu.dot_dimension_numbers<[1], [0], [0], [1], [0, 0, 1, 1], [], []>} : vector<16x64xf32>, vector<64x32xf32>, vector<16x32xf32> -> vector<16x32xf32>
    %c1_103 = arith.constant 1 : index
    %c0_104 = arith.constant 0 : index
    %c0_105 = arith.constant 0 : index
    %279 = vector.load %arg8[%c1_103, %c0_104, %c0_105] : memref<2x32x32xf32, #tpu.memory_space<vmem>>, vector<1x32x32xf32>
    %280 = vector.shape_cast %279 : vector<1x32x32xf32> to vector<32x32xf32>
    %cst_106 = arith.constant dense<0.000000e+00> : vector<16x32xf32>
    %281 = tpu.matmul %278, %280, %cst_106 {dimension_numbers = #tpu.dot_dimension_numbers<[1], [0], [0], [1], [0, 0, 1, 1], [], []>} : vector<16x32xf32>, vector<32x32xf32>, vector<16x32xf32> -> vector<16x32xf32>
    %282 = arith.addf %258, %281 : vector<16x32xf32>
    %283 = arith.addf %282, %180 : vector<16x32xf32>
    %284 = arith.addf %283, %160 : vector<16x32xf32>
    %cst_107 = arith.constant dense<0.000000e+00> : vector<16xf32>
    %285 = vector.multi_reduction <add>, %284, %cst_107 [1] : vector<16x32xf32> to vector<16xf32>
    %286 = vector.shape_cast %285 : vector<16xf32> to vector<16x1xf32>
    %cst_108 = arith.constant 3.200000e+01 : f32
    %287 = vector.broadcast %cst_108 : f32 to vector<16x1xf32>
    %288 = arith.divf %286, %287 : vector<16x1xf32>
    %289 = vector.broadcast %288 : vector<16x1xf32> to vector<16x32xf32>
    %290 = arith.subf %284, %289 : vector<16x32xf32>
    %291 = arith.mulf %290, %290 : vector<16x32xf32>
    %cst_109 = arith.constant dense<0.000000e+00> : vector<16xf32>
    %292 = vector.multi_reduction <add>, %291, %cst_109 [1] : vector<16x32xf32> to vector<16xf32>
    %293 = vector.shape_cast %292 : vector<16xf32> to vector<16x1xf32>
    %cst_110 = arith.constant 3.200000e+01 : f32
    %294 = vector.broadcast %cst_110 : f32 to vector<16x1xf32>
    %295 = arith.divf %293, %294 : vector<16x1xf32>
    %296 = vector.broadcast %288 : vector<16x1xf32> to vector<16x32xf32>
    %297 = arith.subf %284, %296 : vector<16x32xf32>
    %cst_111 = arith.constant 9.99999997E-7 : f32
    %298 = vector.broadcast %cst_111 : f32 to vector<16x1xf32>
    %299 = arith.addf %295, %298 : vector<16x1xf32>
    %300 = math.rsqrt %299 : vector<16x1xf32>
    %301 = vector.broadcast %300 : vector<16x1xf32> to vector<16x32xf32>
    %302 = arith.mulf %297, %301 : vector<16x32xf32>
    %303 = arith.mulf %302, %176 : vector<16x32xf32>
    %304 = arith.addf %303, %178 : vector<16x32xf32>
    %c1_112 = arith.constant 1 : index
    %c0_113 = arith.constant 0 : index
    %c0_114 = arith.constant 0 : index
    %305 = vector.load %arg9[%c1_112, %c0_113, %c0_114] : memref<2x32x128xf32, #tpu.memory_space<vmem>>, vector<1x32x128xf32>
    %306 = vector.shape_cast %305 : vector<1x32x128xf32> to vector<32x128xf32>
    %cst_115 = arith.constant dense<0.000000e+00> : vector<16x128xf32>
    %307 = tpu.matmul %304, %306, %cst_115 {dimension_numbers = #tpu.dot_dimension_numbers<[1], [0], [0], [1], [0, 0, 1, 1], [], []>} : vector<16x32xf32>, vector<32x128xf32>, vector<16x128xf32> -> vector<16x128xf32>
    %308 = arith.addf %307, %188 : vector<16x128xf32>
    %cst_116 = arith.constant 0.000000e+00 : f32
    %309 = vector.broadcast %cst_116 : f32 to vector<16x128xf32>
    %310 = arith.maximumf %308, %309 : vector<16x128xf32>
    %c1_117 = arith.constant 1 : index
    %c0_118 = arith.constant 0 : index
    %c0_119 = arith.constant 0 : index
    %311 = vector.load %arg10[%c1_117, %c0_118, %c0_119] : memref<2x128x32xf32, #tpu.memory_space<vmem>>, vector<1x128x32xf32>
    %312 = vector.shape_cast %311 : vector<1x128x32xf32> to vector<128x32xf32>
    %cst_120 = arith.constant dense<0.000000e+00> : vector<16x32xf32>
    %313 = tpu.matmul %310, %312, %cst_120 {dimension_numbers = #tpu.dot_dimension_numbers<[1], [0], [0], [1], [0, 0, 1, 1], [], []>} : vector<16x128xf32>, vector<128x32xf32>, vector<16x32xf32> -> vector<16x32xf32>
    %314 = arith.addf %313, %182 : vector<16x32xf32>
    %315 = arith.addf %314, %284 : vector<16x32xf32>
    %c0_121 = arith.constant 0 : index
    %c0_122 = arith.constant 0 : index
    %c0_123 = arith.constant 0 : index
    %316 = vector.load %arg11[%c0_121, %c0_122, %c0_123] : memref<2x16x32xf32, #tpu.memory_space<vmem>>, vector<2x16x32xf32>
    %317 = vector.extract_strided_slice %316 {offsets = [0, 0, 0], sizes = [1, 16, 32], strides = [1, 1, 1]} : vector<2x16x32xf32> to vector<1x16x32xf32>
    %318 = vector.shape_cast %317 : vector<1x16x32xf32> to vector<16x32xf32>
    %319 = vector.extract_strided_slice %316 {offsets = [1, 0, 0], sizes = [1, 16, 32], strides = [1, 1, 1]} : vector<2x16x32xf32> to vector<1x16x32xf32>
    %320 = vector.shape_cast %319 : vector<1x16x32xf32> to vector<16x32xf32>
    %cst_124 = arith.constant dense<0.000000e+00> : vector<16xf32>
    %321 = vector.multi_reduction <add>, %315, %cst_124 [1] : vector<16x32xf32> to vector<16xf32>
    %322 = vector.shape_cast %321 : vector<16xf32> to vector<16x1xf32>
    %cst_125 = arith.constant 3.200000e+01 : f32
    %323 = vector.broadcast %cst_125 : f32 to vector<16x1xf32>
    %324 = arith.divf %322, %323 : vector<16x1xf32>
    %325 = vector.broadcast %324 : vector<16x1xf32> to vector<16x32xf32>
    %326 = arith.subf %315, %325 : vector<16x32xf32>
    %327 = arith.mulf %326, %326 : vector<16x32xf32>
    %cst_126 = arith.constant dense<0.000000e+00> : vector<16xf32>
    %328 = vector.multi_reduction <add>, %327, %cst_126 [1] : vector<16x32xf32> to vector<16xf32>
    %329 = vector.shape_cast %328 : vector<16xf32> to vector<16x1xf32>
    %cst_127 = arith.constant 3.200000e+01 : f32
    %330 = vector.broadcast %cst_127 : f32 to vector<16x1xf32>
    %331 = arith.divf %329, %330 : vector<16x1xf32>
    %332 = vector.broadcast %324 : vector<16x1xf32> to vector<16x32xf32>
    %333 = arith.subf %315, %332 : vector<16x32xf32>
    %cst_128 = arith.constant 9.99999997E-7 : f32
    %334 = vector.broadcast %cst_128 : f32 to vector<16x1xf32>
    %335 = arith.addf %331, %334 : vector<16x1xf32>
    %336 = math.rsqrt %335 : vector<16x1xf32>
    %337 = vector.broadcast %336 : vector<16x1xf32> to vector<16x32xf32>
    %338 = arith.mulf %333, %337 : vector<16x32xf32>
    %339 = arith.mulf %338, %318 : vector<16x32xf32>
    %340 = arith.addf %339, %320 : vector<16x32xf32>
    %c0_129 = arith.constant 0 : index
    %c0_130 = arith.constant 0 : index
    %341 = vector.load %arg16[%c0_129, %c0_130] : memref<16x32xf32, #tpu.memory_space<vmem>>, vector<16x32xf32>
    tpu.vector_store %arg16[%c0_129, %c0_130], %340 {strides = array<i32>} : memref<16x32xf32, #tpu.memory_space<vmem>>, vector<16x32xf32>,
    return
  }
  func.func @transform_0(%arg0: i32) -> (i32, i32) {
    %c0_i32 = arith.constant 0 : i32
    %c0_i32_0 = arith.constant 0 : i32
    %c0_i32_1 = arith.constant 0 : i32
    return %c0_i32, %c0_i32_0 : i32, i32
  }
  func.func @transform_1(%arg0: i32) -> (i32, i32) {
    %c0_i32 = arith.constant 0 : i32
    %c0_i32_0 = arith.constant 0 : i32
    %c0_i32_1 = arith.constant 0 : i32
    return %c0_i32, %c0_i32_0 : i32, i32
  }
  func.func @transform_2(%arg0: i32) -> (i32, i32, i32, i32) {
    %c0_i32 = arith.constant 0 : i32
    %c0_i32_0 = arith.constant 0 : i32
    %c0_i32_1 = arith.constant 0 : i32
    %c0_i32_2 = arith.constant 0 : i32
    %c0_i32_3 = arith.constant 0 : i32
    return %c0_i32, %c0_i32_0, %c0_i32_1, %c0_i32_2 : i32, i32, i32, i32
  }
  func.func @transform_3(%arg0: i32) -> (i32, i32, i32) {
    %c0_i32 = arith.constant 0 : i32
    %c0_i32_0 = arith.constant 0 : i32
    %c0_i32_1 = arith.constant 0 : i32
    %c0_i32_2 = arith.constant 0 : i32
    return %c0_i32, %c0_i32_0, %c0_i32_1 : i32, i32, i32
  }
  func.func @transform_4(%arg0: i32) -> (i32, i32, i32, i32) {
    %c0_i32 = arith.constant 0 : i32
    %c0_i32_0 = arith.constant 0 : i32
    %c0_i32_1 = arith.constant 0 : i32
    %c0_i32_2 = arith.constant 0 : i32
    %c0_i32_3 = arith.constant 0 : i32
    return %c0_i32, %c0_i32_0, %c0_i32_1, %c0_i32_2 : i32, i32, i32, i32
  }
  func.func @transform_5(%arg0: i32) -> (i32, i32, i32) {
    %c0_i32 = arith.constant 0 : i32
    %c0_i32_0 = arith.constant 0 : i32
    %c0_i32_1 = arith.constant 0 : i32
    %c0_i32_2 = arith.constant 0 : i32
    return %c0_i32, %c0_i32_0, %c0_i32_1 : i32, i32, i32
  }
  func.func @transform_6(%arg0: i32) -> (i32, i32, i32) {
    %c0_i32 = arith.constant 0 : i32
    %c0_i32_0 = arith.constant 0 : i32
    %c0_i32_1 = arith.constant 0 : i32
    %c0_i32_2 = arith.constant 0 : i32
    return %c0_i32, %c0_i32_0, %c0_i32_1 : i32, i32, i32
  }
  func.func @transform_7(%arg0: i32) -> (i32, i32, i32) {
    %c0_i32 = arith.constant 0 : i32
    %c0_i32_0 = arith.constant 0 : i32
    %c0_i32_1 = arith.constant 0 : i32
    %c0_i32_2 = arith.constant 0 : i32
    return %c0_i32, %c0_i32_0, %c0_i32_1 : i32, i32, i32
  }
  func.func @transform_8(%arg0: i32) -> (i32, i32, i32) {
    %c0_i32 = arith.constant 0 : i32
    %c0_i32_0 = arith.constant 0 : i32
    %c0_i32_1 = arith.constant 0 : i32
    %c0_i32_2 = arith.constant 0 : i32
    return %c0_i32, %c0_i32_0, %c0_i32_1 : i32, i32, i32
  }
  func.func @transform_9(%arg0: i32) -> (i32, i32, i32) {
    %c0_i32 = arith.constant 0 : i32
    %c0_i32_0 = arith.constant 0 : i32
    %c0_i32_1 = arith.constant 0 : i32
    %c0_i32_2 = arith.constant 0 : i32
    return %c0_i32, %c0_i32_0, %c0_i32_1 : i32, i32, i32
  }
  func.func @transform_10(%arg0: i32) -> (i32, i32, i32) {
    %c0_i32 = arith.constant 0 : i32
    %c0_i32_0 = arith.constant 0 : i32
    %c0_i32_1 = arith.constant 0 : i32
    %c0_i32_2 = arith.constant 0 : i32
    return %c0_i32, %c0_i32_0, %c0_i32_1 : i32, i32, i32
  }
  func.func @transform_11(%arg0: i32) -> (i32, i32) {
    %c0_i32 = arith.constant 0 : i32
    %c0_i32_0 = arith.constant 0 : i32
    %c0_i32_1 = arith.constant 0 : i32
    return %c0_i32, %c0_i32_0 : i32, i32
  }
  func.func @transform_12(%arg0: i32) -> (i32, i32) {
    %c0_i32 = arith.constant 0 : i32
    %c0_i32_0 = arith.constant 0 : i32
    %c0_i32_1 = arith.constant 0 : i32
    return %c0_i32, %c0_i32_0 : i32, i32
  }
  func.func @transform_13(%arg0: i32) -> (i32, i32) {
    %c0_i32 = arith.constant 0 : i32
    %c0_i32_0 = arith.constant 0 : i32
    %c0_i32_1 = arith.constant 0 : i32
    return %c0_i32, %c0_i32_0 : i32, i32
  }
  func.func @transform_14(%arg0: i32) -> (i32, i32) {
    %c0_i32 = arith.constant 0 : i32
    %c0_i32_0 = arith.constant 0 : i32
    %c0_i32_1 = arith.constant 0 : i32
    return %c0_i32, %c0_i32_0 : i32, i32
  }
  func.func @transform_15(%arg0: i32) -> (i32, i32) {
    %c0_i32 = arith.constant 0 : i32
    %c0_i32_0 = arith.constant 0 : i32
    %c0_i32_1 = arith.constant 0 : i32
    return %c0_i32, %c0_i32_0 : i32, i32
  }
}

</mosaic_0001>

<bundles_post_ra>
// kernel: tpu_custom_call.1
= control target key start
LH: loop header
LB: loop body
LE: loop exit
PB: predicated region body
PF: predicated region fallthrough
CT: control target
= control target key end

     0   :  { %20 = vsyncpa [#allocation3], 0  ;;  %s4480_s0 = inlined_call_operand.hbm [shape: f32[16,32], index: 0, kind: input, shape index: {}]   ;;  %s4481_s1 = inlined_call_operand.hbm [shape: f32[16,32], index: 1, kind: input, shape index: {}]   ;;  %s4482_s2 = inlined_call_operand.vmem [shape: f32[2,10,16,32], index: 2, kind: input, shape index: {}]   ;;  %s4483_s3 = inlined_call_operand.hbm [shape: f32[2,16,64], index: 3, kind: input, shape index: {}]   ;;  %s4484_s4 = inlined_call_operand.hbm [shape: f32[2,2,16,128], index: 4, kind: input, shape index: {}]   ;;  %s4485_s5 = inlined_call_operand.hbm [shape: f32[2,32,128], index: 5, kind: input, shape index: {}]   ;;  %s4486_s6 = inlined_call_operand.hbm [shape: f32[2,32,32], index: 6, kind: input, shape index: {}]   ;;  %s4487_s7 = inlined_call_operand.hbm [shape: f32[2,32,32], index: 7, kind: input, shape index: {}]   ;;  %s4488_s8 = inlined_call_operand.hbm [shape: f32[2,32,128], index: 8, kind: input, shape index: {}]   ;;  %s4489_s9 = inlined_call_operand.vmem [shape: f32[2,128,32], index: 9, kind: input, shape index: {}]   ;;  %s4490_s10 = inlined_call_operand.hbm [shape: f32[2,16,32], index: 10, kind: input, shape index: {}]   ;;  %s4491_s11 = inlined_call_operand.vmem [shape: f32[64,64], index: 11, kind: input, shape index: {}]   ;;  %s4492_s12 = inlined_call_operand.vmem [shape: f32[64,32], index: 12, kind: input, shape index: {}]   ;;  %s4493_s13 = inlined_call_operand.hbm [shape: f32[16,64], index: 13, kind: input, shape index: {}]   ;;  %s4494_s14 = inlined_call_operand.hbm [shape: f32[64,64], index: 14, kind: input, shape index: {}]   ;;  %s4495_s15 = inlined_call_operand.hbm [shape: f32[16,32], index: 15, kind: output, shape index: {}]  }
   0x1   :  { %21 = vsyncpa [#allocation6], 0 }
   0x2   :  { %22 = vsyncpa [#allocation9], 0 }
   0x3   :  { %23 = vsyncpa [#allocation12], 0 }
   0x4   :  { %24 = vsyncpa [#allocation15], 0 }
   0x5   :  { %25 = vsyncpa [#allocation18], 0 }
   0x6   :  { %26 = vsyncpa [#allocation4], 0  ;;  %s3528_s18 = smov [#allocation5]   ;;  %s3529_s20 = smov [#allocation8]  }
   0x7   :  { %s44_s19 = sshll.u32 %s3528_s18, 4  ;;  %s70_s21 = sshll.u32 %s3529_s20, 4  ;;  %s45_s19 = int_to_ptr.vmem [resolvable:$true] %s44_s19  ;;  %s3625_s21 = int_to_ptr.vmem [resolvable:$true] %s70_s21 }
   0x8   :  { %s3250_s24 = scalar_lea.hbm %s4481_s1, 256 }
   0x9   :  { %p3251_p0 = scmp.ne.s32.totalorder %s4481_s1, %s3250_s24  ;;  %p3254_p1 = scmp.lt.u32.totalorder %s3250_s24, %s4481_s1 }
   0xb   :  { %p3256_p2 = pnand %p3254_p1, %p3251_p0 }
   0xd   :  { %3259 = shalt.err (!%p3256_p2)
}
   0xe   :  { %s3260_s29 = scalar_lea.vmem %s45_s19, 256  ;;  %p3265_p4 = scmp.lt.s32.totalorder %s45_s19, %s45_s19 }
   0xf   :  { %p3261_p3 = scmp.ne.s32.totalorder %s45_s19, %s3260_s29  ;;  %p3266_p5 = scmp.lt.s32.totalorder %s3260_s29, %s3260_s29 }
  0x11   :  { %p3267_p6 = por %p3266_p5, %p3265_p4 }
  0x13   :  { %p3268_p7 = pnand %p3267_p6, %p3261_p3 }
  0x15   :  { %3271 = shalt.err (!%p3268_p7)
}
  0x16   :  { %s3530_s30 = smov 128   ;;  %s3531_s16 = smov 8  }
  0x17   :  { %50 = dma.hbm_to_vmem [thread:$0]  %s4481_s1, 256, %s45_s19, [#allocation6], %s3530_s30, %s3530_s30, %s3531_s16  }
  0x18   :  { %s3272_s23 = scalar_lea.hbm %s4484_s4, 1024 }
  0x19   :  { %p3273_p8 = scmp.ne.s32.totalorder %s4484_s4, %s3272_s23  ;;  %p3276_p9 = scmp.lt.u32.totalorder %s3272_s23, %s4484_s4 }
  0x1b   :  { %p3278_p10 = pnand %p3276_p9, %p3273_p8 }
  0x1d   :  { %3281 = shalt.err (!%p3278_p10)
}
  0x1e   :  { %s3282_s28 = scalar_lea.vmem %s3625_s21, 1024  ;;  %p3287_p12 = scmp.lt.s32.totalorder %s3625_s21, %s3625_s21 }
  0x1f   :  { %p3283_p11 = scmp.ne.s32.totalorder %s3625_s21, %s3282_s28  ;;  %p3288_p13 = scmp.lt.s32.totalorder %s3282_s28, %s3282_s28 }
  0x21   :  { %p3289_p0 = por %p3288_p13, %p3287_p12 }
  0x23   :  { %p3290_p1 = pnand %p3289_p0, %p3283_p11 }
  0x25   :  { %3293 = shalt.err (!%p3290_p1)
}
  0x26   :  { %76 = dma.hbm_to_vmem [thread:$0]  %s4484_s4, 1024, %s3625_s21, [#allocation9], %s3530_s30, %s3530_s30, %s3531_s16  }
  0x27   :  { %s3532_s29 = smov [#allocation11]   ;;  %s3533_s18 = smov [#allocation14]  }
  0x28   :  { %s94_s17 = sshll.u32 %s3532_s29, 4  ;;  %s118_s20 = sshll.u32 %s3533_s18, 4  ;;  %s95_s17 = int_to_ptr.vmem [resolvable:$true] %s94_s17  ;;  %s3662_s20 = int_to_ptr.vmem [resolvable:$true] %s118_s20 }
  0x29   :  { %s3294_s24 = scalar_lea.hbm %s4486_s6, 1024 }
  0x2a   :  { %p3295_p2 = scmp.ne.s32.totalorder %s4486_s6, %s3294_s24  ;;  %p3298_p3 = scmp.lt.u32.totalorder %s3294_s24, %s4486_s6 }
  0x2c   :  { %p3300_p4 = pnand %p3298_p3, %p3295_p2 }
  0x2e   :  { %3303 = shalt.err (!%p3300_p4)
}
  0x2f   :  { %s3304_s4 = scalar_lea.vmem %s95_s17, 1024  ;;  %p3309_p6 = scmp.lt.s32.totalorder %s95_s17, %s95_s17 }
  0x30   :  { %p3305_p5 = scmp.ne.s32.totalorder %s95_s17, %s3304_s4  ;;  %p3310_p7 = scmp.lt.s32.totalorder %s3304_s4, %s3304_s4 }
  0x32   :  { %p3311_p8 = por %p3310_p7, %p3309_p6 }
  0x34   :  { %p3312_p9 = pnand %p3311_p8, %p3305_p5 }
  0x36   :  { %3315 = shalt.err (!%p3312_p9)
}
  0x37   :  { %100 = dma.hbm_to_vmem [thread:$0]  %s4486_s6, 1024, %s95_s17, [#allocation12], %s3530_s30, %s3530_s30, %s3531_s16  }
  0x38   :  { %s3316_s18 = scalar_lea.hbm %s4488_s8, 1024 }
  0x39   :  { %p3317_p10 = scmp.ne.s32.totalorder %s4488_s8, %s3316_s18  ;;  %p3320_p11 = scmp.lt.u32.totalorder %s3316_s18, %s4488_s8 }
  0x3b   :  { %p3322_p12 = pnand %p3320_p11, %p3317_p10 }
  0x3d   :  { %3325 = shalt.err (!%p3322_p12)
}
  0x3e   :  { %s3326_s26 = scalar_lea.vmem %s3662_s20, 1024  ;;  %p3331_p0 = scmp.lt.s32.totalorder %s3662_s20, %s3662_s20 }
  0x3f   :  { %p3327_p13 = scmp.ne.s32.totalorder %s3662_s20, %s3326_s26  ;;  %p3332_p1 = scmp.lt.s32.totalorder %s3326_s26, %s3326_s26 }
  0x41   :  { %p3333_p2 = por %p3332_p1, %p3331_p0 }
  0x43   :  { %p3334_p3 = pnand %p3333_p2, %p3327_p13 }
  0x45   :  { %3337 = shalt.err (!%p3334_p3)
}
  0x46   :  { %124 = dma.hbm_to_vmem [thread:$0]  %s4488_s8, 1024, %s3662_s20, [#allocation15], %s3530_s30, %s3530_s30, %s3531_s16  }
  0x47   :  { %s3534_s27 = smov [#allocation17]   ;;  %s3535_s4 = smov [#allocation2]  }
  0x48   :  { %s148_s28 = sshll.u32 %s3534_s27, 4  ;;  %s32_s21 = sshll.u32 %s3535_s4, 4  ;;  %s149_s28 = int_to_ptr.vmem [resolvable:$true] %s148_s28  ;;  %s3699_s21 = int_to_ptr.vmem [resolvable:$true] %s32_s21 }
  0x49   :  { %s3338_s29 = scalar_lea.hbm %s4493_s13, 256 }
  0x4a   :  { %p3339_p4 = scmp.ne.s32.totalorder %s4493_s13, %s3338_s29  ;;  %p3342_p5 = scmp.lt.u32.totalorder %s3338_s29, %s4493_s13 }
  0x4c   :  { %p3344_p6 = pnand %p3342_p5, %p3339_p4 }
  0x4e   :  { %3347 = shalt.err (!%p3344_p6)
}
  0x4f   :  { %s3348_s8 = scalar_lea.vmem %s149_s28, 256  ;;  %p3353_p8 = scmp.lt.s32.totalorder %s149_s28, %s149_s28 }
  0x50   :  { %p3349_p7 = scmp.ne.s32.totalorder %s149_s28, %s3348_s8  ;;  %p3354_p9 = scmp.lt.s32.totalorder %s3348_s8, %s3348_s8 }
  0x52   :  { %p3355_p10 = por %p3354_p9, %p3353_p8 }
  0x54   :  { %p3356_p11 = pnand %p3355_p10, %p3349_p7 }
  0x56   :  { %3359 = shalt.err (!%p3356_p11)
}
  0x57   :  { %154 = dma.hbm_to_vmem [thread:$0]  %s4493_s13, 256, %s149_s28, [#allocation18], %s3530_s30, %s3530_s30, %s3531_s16  }
  0x58   :  { %s3360_s17 = scalar_lea.hbm %s4480_s0, 256 }
  0x59   :  { %p3361_p12 = scmp.ne.s32.totalorder %s4480_s0, %s3360_s17  ;;  %p3364_p13 = scmp.lt.u32.totalorder %s3360_s17, %s4480_s0 }
  0x5b   :  { %p3366_p0 = pnand %p3364_p13, %p3361_p12 }
  0x5d   :  { %3369 = shalt.err (!%p3366_p0)
}
  0x5e   :  { %s3370_s29 = scalar_lea.vmem %s3699_s21, 256  ;;  %p3375_p2 = scmp.lt.s32.totalorder %s3699_s21, %s3699_s21 }
  0x5f   :  { %p3371_p1 = scmp.ne.s32.totalorder %s3699_s21, %s3370_s29  ;;  %p3376_p3 = scmp.lt.s32.totalorder %s3370_s29, %s3370_s29 }
  0x61   :  { %p3377_p4 = por %p3376_p3, %p3375_p2 }
  0x63   :  { %p3378_p5 = pnand %p3377_p4, %p3371_p1 }
  0x65   :  { %3381 = shalt.err (!%p3378_p5)
}
  0x66   :  { %38 = dma.hbm_to_vmem [thread:$0]  %s4480_s0, 256, %s3699_s21, [#allocation3], %s3530_s30, %s3530_s30, %s3531_s16  }
  0x67   :  { %s3536_s18 = smov [#allocation7]   ;;  %s3537_s23 = smov [#allocation10]  }
  0x68   :  { %s58_s22 = sshll.u32 %s3536_s18, 4  ;;  %s82_s24 = sshll.u32 %s3537_s23, 4  ;;  %s59_s22 = int_to_ptr.vmem [resolvable:$true] %s58_s22  ;;  %s3736_s24 = int_to_ptr.vmem [resolvable:$true] %s82_s24 }
  0x69   :  { %s3382_s25 = scalar_lea.hbm %s4483_s3, 512 }
  0x6a   :  { %p3383_p6 = scmp.ne.s32.totalorder %s4483_s3, %s3382_s25  ;;  %p3386_p7 = scmp.lt.u32.totalorder %s3382_s25, %s4483_s3 }
  0x6c   :  { %p3388_p8 = pnand %p3386_p7, %p3383_p6 }
  0x6e   :  { %3391 = shalt.err (!%p3388_p8)
}
  0x6f   :  { %s3392_s0 = scalar_lea.vmem %s59_s22, 512  ;;  %p3397_p10 = scmp.lt.s32.totalorder %s59_s22, %s59_s22 }
  0x70   :  { %p3393_p9 = scmp.ne.s32.totalorder %s59_s22, %s3392_s0  ;;  %p3398_p11 = scmp.lt.s32.totalorder %s3392_s0, %s3392_s0 }
  0x72   :  { %p3399_p12 = por %p3398_p11, %p3397_p10 }
  0x74   :  { %p3400_p13 = pnand %p3399_p12, %p3393_p9 }
  0x76   :  { %3403 = shalt.err (!%p3400_p13)
}
  0x77   :  { %64 = dma.hbm_to_vmem [thread:$0]  %s4483_s3, 512, %s59_s22, [#allocation6], %s3530_s30, %s3530_s30, %s3531_s16  }
  0x78   :  { %s3404_s29 = scalar_lea.hbm %s4485_s5, 1024 }
  0x79   :  { %p3405_p0 = scmp.ne.s32.totalorder %s4485_s5, %s3404_s29  ;;  %p3408_p1 = scmp.lt.u32.totalorder %s3404_s29, %s4485_s5 }
  0x7b   :  { %p3410_p2 = pnand %p3408_p1, %p3405_p0 }
  0x7d   :  { %3413 = shalt.err (!%p3410_p2)
}
  0x7e   :  { %s3414_s8 = scalar_lea.vmem %s3736_s24, 1024  ;;  %p3419_p4 = scmp.lt.s32.totalorder %s3736_s24, %s3736_s24 }
  0x7f   :  { %p3415_p3 = scmp.ne.s32.totalorder %s3736_s24, %s3414_s8  ;;  %p3420_p5 = scmp.lt.s32.totalorder %s3414_s8, %s3414_s8 }
  0x81   :  { %p3421_p6 = por %p3420_p5, %p3419_p4 }
  0x83   :  { %p3422_p7 = pnand %p3421_p6, %p3415_p3 }
  0x85   :  { %3425 = shalt.err (!%p3422_p7)
}
  0x86   :  { %88 = dma.hbm_to_vmem [thread:$0]  %s4485_s5, 1024, %s3736_s24, [#allocation9], %s3530_s30, %s3530_s30, %s3531_s16  }
  0x87   :  { %s3538_s20 = smov [#allocation13]   ;;  %s3539_s26 = smov [#allocation16]  }
  0x88   :  { %s106_s25 = sshll.u32 %s3538_s20, 4  ;;  %s132_s6 = sshll.u32 %s3539_s26, 4  ;;  %s107_s25 = int_to_ptr.vmem [resolvable:$true] %s106_s25  ;;  %s3773_s6 = int_to_ptr.vmem [resolvable:$true] %s132_s6 }
  0x89   :  { %s3426_s0 = scalar_lea.hbm %s4487_s7, 1024 }
  0x8a   :  { %p3427_p8 = scmp.ne.s32.totalorder %s4487_s7, %s3426_s0  ;;  %p3430_p9 = scmp.lt.u32.totalorder %s3426_s0, %s4487_s7 }
  0x8c   :  { %p3432_p10 = pnand %p3430_p9, %p3427_p8 }
  0x8e   :  { %3435 = shalt.err (!%p3432_p10)
}
  0x8f   :  { %s3436_s5 = scalar_lea.vmem %s107_s25, 1024  ;;  %p3441_p12 = scmp.lt.s32.totalorder %s107_s25, %s107_s25 }
  0x90   :  { %p3437_p11 = scmp.ne.s32.totalorder %s107_s25, %s3436_s5  ;;  %p3442_p13 = scmp.lt.s32.totalorder %s3436_s5, %s3436_s5 }
  0x92   :  { %p3443_p0 = por %p3442_p13, %p3441_p12 }
  0x94   :  { %p3444_p1 = pnand %p3443_p0, %p3437_p11 }
  0x96   :  { %3447 = shalt.err (!%p3444_p1)
}
  0x97   :  { %112 = dma.hbm_to_vmem [thread:$0]  %s4487_s7, 1024, %s107_s25, [#allocation12], %s3530_s30, %s3530_s30, %s3531_s16  }
  0x98   :  { %s3448_s18 = scalar_lea.hbm %s4490_s10, 512 }
  0x99   :  { %p3449_p2 = scmp.ne.s32.totalorder %s4490_s10, %s3448_s18  ;;  %p3452_p3 = scmp.lt.u32.totalorder %s3448_s18, %s4490_s10 }
  0x9b   :  { %p3454_p4 = pnand %p3452_p3, %p3449_p2 }
  0x9d   :  { %3457 = shalt.err (!%p3454_p4)
}
  0x9e   :  { %s3458_s20 = scalar_lea.vmem %s3773_s6, 512  ;;  %p3463_p6 = scmp.lt.s32.totalorder %s3773_s6, %s3773_s6 }
  0x9f   :  { %p3459_p5 = scmp.ne.s32.totalorder %s3773_s6, %s3458_s20  ;;  %p3464_p7 = scmp.lt.s32.totalorder %s3458_s20, %s3458_s20 }
  0xa1   :  { %p3465_p8 = por %p3464_p7, %p3463_p6 }
  0xa3   :  { %p3466_p9 = pnand %p3465_p8, %p3459_p5 }
  0xa5   :  { %3469 = shalt.err (!%p3466_p9)
}
  0xa6   :  { %138 = dma.hbm_to_vmem [thread:$0]  %s4490_s10, 512, %s3773_s6, [#allocation15], %s3530_s30, %s3530_s30, %s3531_s16  }
  0xa7   :  { %s3540_s26 = smov [#allocation19]   ;;  %s3470_s21 = scalar_lea.hbm %s4494_s14, 1024 }
  0xa8   :  { %s160_s17 = sshll.u32 %s3540_s26, 4  ;;  %p3471_p10 = scmp.ne.s32.totalorder %s4494_s14, %s3470_s21  ;;  %s161_s17 = int_to_ptr.vmem [resolvable:$true] %s160_s17 }
  0xa9   :  { %p3474_p11 = scmp.lt.u32.totalorder %s3470_s21, %s4494_s14 }
  0xab   :  { %p3476_p12 = pnand %p3474_p11, %p3471_p10 }
  0xad   :  { %3479 = shalt.err (!%p3476_p12)
}
  0xae   :  { %s3480_s24 = scalar_lea.vmem %s161_s17, 1024  ;;  %p3485_p0 = scmp.lt.s32.totalorder %s161_s17, %s161_s17 }
  0xaf   :  { %p3481_p13 = scmp.ne.s32.totalorder %s161_s17, %s3480_s24  ;;  %p3486_p1 = scmp.lt.s32.totalorder %s3480_s24, %s3480_s24 }
  0xb1   :  { %p3487_p2 = por %p3486_p1, %p3485_p0 }
  0xb3   :  { %p3488_p3 = pnand %p3487_p2, %p3481_p13 }
  0xb5   :  { %3491 = shalt.err (!%p3488_p3)
}
  0xb6   :  { %166 = dma.hbm_to_vmem [thread:$0]  %s4494_s14, 1024, %s161_s17, [#allocation18], %s3530_s30, %s3530_s30, %s3531_s16  }
  0xb7   :  { %3514 = dma.done.wait [#allocation3], 256  }
  0xb8   :  { %3515 = vsyncadd [#allocation3], 4294967040 }
  0xb9   :  { %3516 = dma.done.wait [#allocation6], 768  }
  0xba   :  { %3517 = vsyncadd [#allocation6], 4294966528 }
  0xbb   :  { %3518 = dma.done.wait [#allocation9], 2048  }
  0xbc   :  { %3519 = vsyncadd [#allocation9], 4294965248 }
  0xbd   :  { %3520 = dma.done.wait [#allocation12], 2048  }
  0xbe   :  { %3521 = vsyncadd [#allocation12], 4294965248 }
  0xbf   :  { %3522 = dma.done.wait [#allocation15], 1536  }
  0xc0   :  { %3523 = vsyncadd [#allocation15], 4294965760 }
  0xc1   :  { %3524 = dma.done.wait [#allocation18], 1280  }
  0xc2   :  { %3525 = vsyncadd [#allocation18], 4294966016  ;;  %vm256_vm0 = vcmask 261120   ;;  %v3825_v0 = vld [vmem:[#allocation2] sm:$0xff]  ;;  %v3827_v1 = vld [vmem:[#allocation2 + $0x8] sm:$0xff]  ;;  %s3541_s22 = smov 96  }
  0xc3   :  { %v257_v2 = vsel %vm256_vm0, %v3825_v0, 0.0  ;;  %v260_v3 = vsel %vm256_vm0, %v3827_v1, 0.0  ;;  %v288_v14 = vld [vmem:[#allocation10] sm:$0xff]  ;;  %v289_v15 = vld [vmem:[#allocation10 + $0x8] sm:$0xff]  ;;  %v290_v16 = vld [vmem:[#allocation10 + $0x10] sm:$0xff]  ;;  %s3542_s25 = smov 32  }
  0xc4   :  { %258 = vadd.xlane.f32.xlu0 %v257_v2  ;;  %v2901_v17 = vpack.c.bf16 %v289_v15, %v288_v14  ;;  %v291_v18 = vld [vmem:[#allocation10 + $0x18] sm:$0xff]  ;;  %v230_v27 = vld [vmem:[%s4482_s2] sm:$0xff]  ;;  %v232_v29 = vld [vmem:[%s4482_s2 + $0x10] sm:$0xff]  ;;  %vm588_vm1 = vcmask 523264   ;;  %s3543_s24 = smov 64  }
  0xc5   :  { %v2905_v19 = vpack.c.bf16 %v291_v18, %v290_v16  ;;  %v231_v32 = vld [vmem:[%s4482_s2 + $0x8] sm:$0xff]  ;;  %v233_v35 = vld [vmem:[%s4482_s2 + $0x18] sm:$0xff]  ;;  %v250_v39 = vld [vmem:[#allocation8] sm:$0xff] }
  0xc6   :  { %2902 = vmatprep.subr.bf16.mxu0 %v2901_v17  ;;  %v251_v38 = vld [vmem:[#allocation8 + $0x8] sm:$0xff]  ;;  %v465_v48 = vld [vmem:[#allocation11] sm:$0xff]  ;;  %v467_v50 = vld [vmem:[#allocation11 + $0x10] sm:$0xff] }
  0xc7   :  { %2904 = vmatpush3.bf16.msra.mxu0 %v2901_v17  ;;  %v466_v49 = vld [vmem:[#allocation11 + $0x8] sm:$0xff]  ;;  %v468_v52 = vld [vmem:[#allocation11 + $0x18] sm:$0xff]  ;;  %v3861_v53 = vld [vmem:[#allocation5] sm:$0xff] }
  0xc8   :  { %261 = vadd.xlane.f32.xlu0 %v260_v3  ;;  %2906 = vmatprep.subr.bf16.mxu0 %v2905_v19  ;;  %v2909_v51 = vpack.c.bf16 %v466_v49, %v465_v48  ;;  %v2913_v54 = vpack.c.bf16 %v468_v52, %v467_v50  ;;  %v3865_v55 = vld [vmem:[#allocation5 + $0x8] sm:$0xff]  ;;  %v234_v52 = vld [vmem:[%s4482_s2 + $0x20] sm:$0xff]  ;;  %vm3944_vm2 = vmpackc.low %vm588_vm1, %vm588_vm1 }
  0xc9   :  { %2648 = vmatprep.mubr.msk.f32.mxu1 %vm256_vm0, %v3861_v53 }
  0xca   :  { %2910 = vmatprep.subr.bf16.mxu1 %v2909_v51 }
  0xcb   :  { %2908 = vmatpush3.bf16.msra.mxu0 %v2905_v19  ;;  %2912 = vmatpush3.bf16.msra.mxu1 %v2909_v51 }
  0xcc   :  { %2914 = vmatprep.subr.bf16.mxu1 %v2913_v54 }
  0xcf   :  { %2916 = vmatpush3.bf16.msra.mxu1 %v2913_v54 }
  0xd2   :  { %2649 = vmatmul.mubr.msk.f32.vlgmr.msra.gmra.mrb[0].mxu1 %vm256_vm0, %v3865_v55 }
 0x151   :  { %v259_v4 = vpop.xlane.xlu0 %258 }
 0x152   :  { %v264_v5 = vmul.f32 0.03125, %v259_v4  ;;  %v238_v4 = vld [vmem:[%s4482_s2 + $0x40] sm:$0xff] }
 0x154   :  { %v266_v6 = vsub.f32 %v3825_v0, %v264_v5  ;;  %v240_v5 = vld [vmem:[%s4482_s2 + $0x50] sm:$0xff] }
 0x155   :  { %v262_v7 = vpop.xlane.xlu0 %261 }
 0x156   :  { %v265_v8 = vmul.f32 0.03125, %v262_v7  ;;  %v268_v9 = vmul.f32 %v266_v6, %v266_v6 }
 0x158   :  { %v267_v10 = vsub.f32 %v3827_v1, %v265_v8  ;;  %v270_v11 = vsel %vm256_vm0, %v268_v9, 0.0 }
 0x159   :  { %271 = vadd.xlane.f32.xlu1 %v270_v11  ;;  %v241_v11 = vld [vmem:[%s4482_s2 + $0x58] sm:$0xff] }
 0x15a   :  { %v269_v12 = vmul.f32 %v267_v10, %v267_v10 }
 0x15c   :  { %v273_v13 = vsel %vm256_vm0, %v269_v12, 0.0 }
 0x15d   :  { %274 = vadd.xlane.f32.xlu1 %v273_v13 }
 0x1a5   :  { %v2650_v12 = vpop.f32.mrb[0].mxu1 }
 0x1a6   :  { %v541_v13 = vpop.f32.mrb[1].mxu1 }
 0x1e6   :  { %v272_v20 = vpop.xlane.xlu1 %271 }
 0x1e7   :  { %v276_v21 = vmul.f32 0.03125, %v272_v20 }
 0x1e9   :  { %v278_v22 = vadd.f32 1e-06, %v276_v21 }
 0x1ea   :  { %v275_v23 = vpop.xlane.xlu1 %274 }
 0x1eb   :  { %3198 = vrsqrt.f32 %v278_v22  ;;  %v277_v24 = vmul.f32 0.03125, %v275_v23 }
 0x1ed   :  { %v279_v25 = vadd.f32 1e-06, %v277_v24 }
 0x1ef   :  { %3200 = vrsqrt.f32 %v279_v25 }
 0x1f5   :  { %v3199_v26 = vpop.eup %3198 }
 0x1f6   :  { %v282_v28 = vmul.f32 %v3199_v26, %v266_v6 }
 0x1f8   :  { %v284_v30 = vmul.f32 %v282_v28, %v230_v27 }
 0x1f9   :  { %v3201_v31 = vpop.eup %3200 }
 0x1fa   :  { %v286_v33 = vadd.f32 %v284_v30, %v232_v29  ;;  %v283_v34 = vmul.f32 %v3201_v31, %v267_v10  ;;  %v239_v10 = vld [vmem:[%s4482_s2 + $0x48] sm:$0xff] }
 0x1fc   :  { %2637 = vmatprep.mubr.msk.f32.mxu0 %vm256_vm0, %v286_v33  ;;  %v285_v36 = vmul.f32 %v283_v34, %v231_v32 }
 0x1fe   :  { %v287_v37 = vadd.f32 %v285_v36, %v233_v35 }
 0x200   :  { %2638 = vmatmul.mubr.msk.f32.vlgmr.msra.gmra.mrb[0].mxu0 %vm256_vm0, %v287_v37 }
 0x2d3   :  { %v2639_v40 = vpop.f32.mrb[0].mxu0 }
 0x2d4   :  { %v3851_v41 = vadd.f32 %v2639_v40, %v251_v38  ;;  %v364_v42 = vpop.f32.mrb[1].mxu0 }
 0x2d5   :  { %v3853_v43 = vadd.f32 %v364_v42, %v250_v39 }
 0x2d6   :  { %407 = vrot.lane.b32.xlu1 %v3851_v41, %s3541_s22  ;;  %v376_v2 = vsel %vm256_vm0, %v3851_v41, 0.0 }
 0x2d7   :  { %405 = vrot.lane.b32.xlu0 %v3853_v43, %s3541_s22  ;;  %v373_v3 = vsel %vm256_vm0, %v3853_v43, 0.0 }
 0x348   :  { %v408_v44 = vpop.permute.xlu1 %407 }
 0x349   :  { %v406_v45 = vpop.permute.xlu0 %405  ;;  %v414_v46 = vsel %vm256_vm0, %v408_v44, 0.0 }
 0x34a   :  { %415 = vadd.xlane.f32.xlu0 %v414_v46  ;;  %v411_v47 = vsel %vm256_vm0, %v406_v45, 0.0 }
 0x34b   :  { %412 = vadd.xlane.f32.xlu1 %v411_v47 }
 0x3d7   :  { %v416_v56 = vpop.xlane.xlu0 %415 }
 0x3d8   :  { %v418_v57 = vmul.f32 0.03125, %v416_v56  ;;  %v413_v58 = vpop.xlane.xlu1 %412 }
 0x3d9   :  { %v417_v59 = vmul.f32 0.03125, %v413_v58  ;;  %v235_v58 = vld [vmem:[%s4482_s2 + $0x28] sm:$0xff] }
 0x3da   :  { %v420_v60 = vsub.f32 %v3851_v41, %v418_v57  ;;  %v236_v57 = vld [vmem:[%s4482_s2 + $0x30] sm:$0xff] }
 0x3db   :  { %v419_v61 = vsub.f32 %v3853_v43, %v417_v59 }
 0x3dc   :  { %v422_v62 = vmul.f32 %v420_v60, %v420_v60 }
 0x3dd   :  { %v421_v63 = vmul.f32 %v419_v61, %v419_v61 }
 0x3de   :  { %427 = vrot.lane.b32.xlu1 %v422_v62, %s3541_s22  ;;  %v237_v62 = vld [vmem:[%s4482_s2 + $0x38] sm:$0xff] }
 0x3df   :  { %425 = vrot.lane.b32.xlu0 %v421_v63, %s3541_s22 }
 0x3fe   :  { %377 = vadd.xlane.f32.xlu0 %v376_v2 }
 0x402   :  { %374 = vadd.xlane.f32.xlu1 %v373_v3 }
 0x414   :  { %447 = vrot.lane.b32.xlu0 %v238_v4, %s3542_s25  ;;  %v3920_v4 = vld [vmem:[%s4491_s11] sm:$0xff] }
 0x418   :  { %457 = vrot.lane.b32.xlu0 %v240_v5, %s3542_s25 }
 0x450   :  { %v428_v6 = vpop.permute.xlu1 %427 }
 0x451   :  { %v426_v7 = vpop.permute.xlu0 %425  ;;  %v434_v8 = vsel %vm256_vm0, %v428_v6, 0.0  ;;  %v3926_v6 = vld [vmem:[%s4491_s11 + $0x8] sm:$0xff] }
 0x452   :  { %435 = vadd.xlane.f32.xlu1 %v434_v8  ;;  %v431_v9 = vsel %vm256_vm0, %v426_v7, 0.0  ;;  %v3931_v7 = vld [vmem:[%s4491_s11 + $0x18] sm:$0xff] }
 0x453   :  { %432 = vadd.xlane.f32.xlu0 %v431_v9 }
 0x463   :  { %449 = vrot.lane.b32.xlu1 %v239_v10, %s3542_s25  ;;  %v3936_v10 = vld [vmem:[%s4491_s11 + $0x10] sm:$0xff] }
 0x469   :  { %459 = vrot.lane.b32.xlu0 %v241_v11, %s3542_s25 }
 0x48b   :  { %v378_v14 = vpop.xlane.xlu0 %377 }
 0x48c   :  { %v380_v15 = vmul.f32 0.03125, %v378_v14 }
 0x48e   :  { %v382_v16 = vsub.f32 %v3851_v41, %v380_v15 }
 0x48f   :  { %v375_v17 = vpop.xlane.xlu1 %374  ;;  %v448_v24 = vpop.permute.xlu0 %447 }
 0x490   :  { %v379_v18 = vmul.f32 0.03125, %v375_v17  ;;  %v384_v19 = vmul.f32 %v382_v16, %v382_v16 }
 0x492   :  { %v381_v20 = vsub.f32 %v3853_v43, %v379_v18  ;;  %v388_v21 = vsel %vm256_vm0, %v384_v19, 0.0  ;;  %v3954_v19 = vld [vmem:[%s4491_s11 + $0x28] sm:$0xff] }
 0x493   :  { %389 = vadd.xlane.f32.xlu0 %v388_v21  ;;  %v458_v25 = vpop.permute.xlu0 %457 }
 0x494   :  { %v383_v22 = vmul.f32 %v381_v20, %v381_v20 }
 0x496   :  { %v385_v23 = vsel %vm256_vm0, %v383_v22, 0.0 }
 0x497   :  { %386 = vadd.xlane.f32.xlu1 %v385_v23 }
 0x4a8   :  { %572 = vrot.lane.b32.xlu1 %v541_v13, %s3542_s25 }
 0x4df   :  { %v436_v26 = vpop.xlane.xlu1 %435 }
 0x4e0   :  { %v438_v27 = vmul.f32 0.03125, %v436_v26  ;;  %v433_v28 = vpop.xlane.xlu0 %432 }
 0x4e1   :  { %v437_v29 = vmul.f32 0.03125, %v433_v28 }
 0x4e2   :  { %v440_v30 = vadd.f32 1e-06, %v438_v27 }
 0x4e3   :  { %v439_v31 = vadd.f32 1e-06, %v437_v29  ;;  %v450_v35 = vpop.permute.xlu1 %449  ;;  %v254_v29 = vld [vmem:[#allocation7] sm:$0xff] }
 0x4e4   :  { %3202 = vrsqrt.f32 %v440_v30  ;;  %v460_v38 = vpop.permute.xlu0 %459 }
 0x4e5   :  { %3204 = vrsqrt.f32 %v439_v31 }
 0x4ee   :  { %v3203_v32 = vpop.eup %3202 }
 0x4ef   :  { %v3205_v33 = vpop.eup %3204  ;;  %v444_v34 = vmul.f32 %v3203_v32, %v420_v60 }
 0x4f0   :  { %v443_v36 = vmul.f32 %v3205_v33, %v419_v61  ;;  %v255_v33 = vld [vmem:[#allocation7 + $0x8] sm:$0xff] }
 0x4f1   :  { %v454_v37 = vmul.f32 %v450_v35, %v444_v34 }
 0x4f2   :  { %v453_v39 = vmul.f32 %v448_v24, %v443_v36  ;;  %v3970_v24 = vld [vmem:[%s4491_s11 + $0x38] sm:$0xff] }
 0x4f3   :  { %v464_v40 = vadd.f32 %v460_v38, %v454_v37  ;;  %v3993_v37 = vld [vmem:[#allocation17 + $0x8] sm:$0xff]  ;;  %v3995_v38 = vld [vmem:[#allocation17] sm:$0xff] }
 0x4f4   :  { %v463_v42 = vadd.f32 %v458_v25, %v453_v39  ;;  %v3979_v25 = vld [vmem:[%s4491_s11 + $0x30] sm:$0xff] }
 0x4f5   :  { %566 = vrot.lane.b32.xlu0 %v464_v40, %s3541_s22 }
 0x4f6   :  { %564 = vrot.lane.b32.xlu1 %v463_v42, %s3541_s22 }
 0x4fa   :  { %574 = vrot.lane.b32.xlu1 %v2650_v12, %s3542_s25 }
 0x520   :  { %v390_v44 = vpop.xlane.xlu0 %389 }
 0x521   :  { %v392_v45 = vmul.f32 0.03125, %v390_v44 }
 0x523   :  { %v394_v46 = vadd.f32 1e-06, %v392_v45 }
 0x524   :  { %v387_v47 = vpop.xlane.xlu1 %386 }
 0x525   :  { %v391_v48 = vmul.f32 0.03125, %v387_v47  ;;  %3206 = vrsqrt.f32 %v394_v46  ;;  %v222_v47 = vld [vmem:[#allocation19] sm:$0xff] }
 0x527   :  { %v393_v49 = vadd.f32 1e-06, %v391_v48  ;;  %v223_v48 = vld [vmem:[#allocation19 + $0x8] sm:$0xff] }
 0x528   :  { %v573_v2 = vpop.permute.xlu1 %572 }
 0x529   :  { %3208 = vrsqrt.f32 %v393_v49  ;;  %v4001_v49 = vpack.c.bf16 %v223_v48, %v222_v47  ;;  %v944_v48 = vld [vmem:[#allocation13] sm:$0xff] }
 0x52b   :  { %2942 = vmatprep.subr.bf16.mxu1 %v4001_v49 }
 0x52c   :  { %2944 = vmatpush3.bf16.msra.mxu1 %v4001_v49 }
 0x52f   :  { %v3207_v50 = vpop.eup %3206 }
 0x530   :  { %v398_v56 = vmul.f32 %v3207_v50, %v382_v16  ;;  %v213_v50 = vld [vmem:[%s4492_s12 + $0x8] sm:$0xff] }
 0x532   :  { %v400_v61 = vmul.f32 %v398_v56, %v235_v58  ;;  %v215_v56 = vld [vmem:[%s4492_s12 + $0x18] sm:$0xff]  ;;  %v226_v58 = vld [vmem:[#allocation19 + $0x20] sm:$0xff] }
 0x533   :  { %v3209_v51 = vpop.eup %3208 }
 0x534   :  { %v397_v54 = vmul.f32 %v3209_v51, %v381_v20  ;;  %v402_v63 = vadd.f32 %v400_v61, %v237_v62  ;;  %v3963_v20 = vld [vmem:[%s4491_s11 + $0x20] sm:$0xff]  ;;  %v217_v61 = vld [vmem:[%s4492_s12 + $0x28] sm:$0xff]  ;;  %v214_v62 = vld [vmem:[%s4492_s12 + $0x10] sm:$0xff] }
 0x535   :  { %v224_v51 = vld [vmem:[#allocation19 + $0x10] sm:$0xff] }
 0x536   :  { %v399_v59 = vmul.f32 %v397_v54, %v234_v52  ;;  %v225_v52 = vld [vmem:[#allocation19 + $0x18] sm:$0xff] }
 0x537   :  { %v4009_v54 = vpack.c.bf16 %v225_v52, %v224_v51  ;;  %v946_v51 = vld [vmem:[#allocation13 + $0x10] sm:$0xff] }
 0x538   :  { %v401_v60 = vadd.f32 %v399_v59, %v236_v57  ;;  %v212_v57 = vld [vmem:[%s4492_s12] sm:$0xff]  ;;  %v227_v59 = vld [vmem:[#allocation19 + $0x28] sm:$0xff] }
 0x539   :  { %2946 = vmatprep.subr.bf16.mxu1 %v4009_v54 }
 0x53a   :  { %552 = vrot.lane.b32.xlu1 %v401_v60, %s3542_s25  ;;  %2948 = vmatpush3.bf16.msra.mxu1 %v4009_v54 }
 0x53e   :  { %554 = vrot.lane.b32.xlu1 %v402_v63, %s3542_s25 }
 0x567   :  { %v567_v8 = vpop.permute.xlu0 %566 }
 0x568   :  { %v565_v3 = vpop.permute.xlu1 %564 }
 0x569   :  { %v578_v5 = vsel %vm256_vm0, %v565_v3, %v573_v2  ;;  %v229_v2 = vld [vmem:[#allocation19 + $0x38] sm:$0xff] }
 0x56a   :  { %v580_v12 = vmul.f32 %v578_v5, %v3920_v4  ;;  %v582_v16 = vmul.f32 %v578_v5, %v3936_v10  ;;  %v584_v22 = vmul.f32 %v578_v5, %v3963_v20  ;;  %v586_v27 = vmul.f32 %v578_v5, %v3979_v25  ;;  %v219_v5 = vld [vmem:[%s4492_s12 + $0x38] sm:$0xff] }
 0x56c   :  { %v575_v9 = vpop.permute.xlu1 %574 }
 0x56d   :  { %v579_v11 = vsel %vm256_vm0, %v567_v8, %v575_v9  ;;  %v216_v8 = vld [vmem:[%s4492_s12 + $0x20] sm:$0xff]  ;;  %v218_v9 = vld [vmem:[%s4492_s12 + $0x30] sm:$0xff] }
 0x56e   :  { %v581_v13 = vmul.f32 %v579_v11, %v3926_v6  ;;  %v583_v14 = vmul.f32 %v579_v11, %v3931_v7  ;;  %v585_v21 = vmul.f32 %v579_v11, %v3954_v19  ;;  %v587_v26 = vmul.f32 %v579_v11, %v3970_v24 }
 0x570   :  { %v2917_v17 = vpack.c.bf16 %v581_v13, %v580_v12  ;;  %v2923_v18 = vpack.c.bf16 %v583_v14, %v582_v16  ;;  %v2929_v23 = vpack.c.bf16 %v585_v21, %v584_v22  ;;  %v2935_v28 = vpack.c.bf16 %v587_v26, %v586_v27 }
 0x572   :  { %2919 = vmatprep.subr.msk.bf16.mxu0 %vm3944_vm2, %v2917_v17 }
 0x573   :  { %2922 = vmatpush3.bf16.xpose.msk.msra.mxu0 %vm3944_vm2, %v2917_v17 }
 0x574   :  { %2925 = vmatprep.subr.msk.bf16.mxu0 %vm3944_vm2, %v2923_v18 }
 0x57b   :  { %2928 = vmatpush3.bf16.xpose.msk.msra.mxu0 %vm3944_vm2, %v2923_v18 }
 0x57c   :  { %2931 = vmatprep.subr.msk.bf16.mxu0 %vm3944_vm2, %v2929_v23 }
 0x583   :  { %2934 = vmatpush3.bf16.xpose.msk.msra.mxu0 %vm3944_vm2, %v2929_v23 }
 0x584   :  { %2937 = vmatprep.subr.msk.bf16.mxu0 %vm3944_vm2, %v2935_v28 }
 0x58b   :  { %2940 = vmatpush3.bf16.xpose.msk.msra.mxu0 %vm3944_vm2, %v2935_v28 }
 0x5ac   :  { %v553_v30 = vpop.permute.xlu1 %552 }
 0x5ad   :  { %v558_v31 = vsel %vm256_vm0, %v401_v60, %v553_v30  ;;  %v4020_v60 = vpack.c.bf16 %v227_v59, %v226_v58 }
 0x5ae   :  { %v560_v32 = vadd.f32 %v558_v31, %v254_v29 }
 0x5af   :  { %2950 = vmatprep.subr.bf16.mxu1 %v4020_v60 }
 0x5b0   :  { %2667 = vmatprep.mubr.msk.f32.mxu0 %vm588_vm1, %v560_v32  ;;  %v555_v34 = vpop.permute.xlu1 %554  ;;  %2952 = vmatpush3.bf16.msra.mxu1 %v4020_v60 }
 0x5b1   :  { %v559_v35 = vsel %vm256_vm0, %v402_v63, %v555_v34  ;;  %v228_v63 = vld [vmem:[#allocation19 + $0x30] sm:$0xff] }
 0x5b2   :  { %v561_v36 = vadd.f32 %v559_v35, %v255_v33  ;;  %v4032_v3 = vpack.c.bf16 %v229_v2, %v228_v63 }
 0x5b4   :  { %2668 = vmatmul.mubr.msk.f32.vlgmr.msra.gmra.mrb[2].mxu0 %vm588_vm1, %v561_v36  ;;  %2954 = vmatprep.subr.bf16.mxu1 %v4032_v3 }
 0x5b5   :  { %2956 = vmatpush3.bf16.msra.mxu1 %v4032_v3 }
 0x687   :  { %v2669_v39 = vpop.f32.mrb[2].mxu0 }
 0x688   :  { %v691_v40 = vadd.f32 %v2669_v39, %v3993_v37  ;;  %v685_v42 = vpop.f32.mrb[3].mxu0 }
 0x689   :  { %v686_v44 = vadd.f32 %v685_v42, %v3995_v38 }
 0x68a   :  { %v697_v45 = vsel %vm588_vm1, %v691_v40, -inf }
 0x68b   :  { %698 = vmax.xlane.f32.xlu1 %v697_v45  ;;  %v694_v46 = vsel %vm588_vm1, %v686_v44, -inf }
 0x68c   :  { %695 = vmax.xlane.f32.xlu0 %v694_v46 }
 0x69c   :  { %801 = vrot.lane.b32.xlu1 %v213_v50, %s3543_s24  ;;  %v945_v50 = vld [vmem:[#allocation13 + $0x8] sm:$0xff] }
 0x69d   :  { %v2973_v52 = vpack.c.bf16 %v945_v50, %v944_v48 }
 0x69f   :  { %2974 = vmatprep.subr.bf16.mxu0 %v2973_v52 }
 0x6a0   :  { %805 = vrot.lane.b32.xlu1 %v215_v56, %s3543_s24  ;;  %v947_v56 = vld [vmem:[#allocation13 + $0x18] sm:$0xff]  ;;  %2976 = vmatpush3.bf16.msra.mxu0 %v2973_v52 }
 0x6a2   :  { %799 = vrot.lane.b32.xlu0 %v212_v57, %s3543_s24  ;;  %v2977_v57 = vpack.c.bf16 %v947_v56, %v946_v51 }
 0x6a4   :  { %809 = vrot.lane.b32.xlu1 %v217_v61, %s3543_s24  ;;  %2978 = vmatprep.subr.bf16.mxu0 %v2977_v57 }
 0x6a5   :  { %2980 = vmatpush3.bf16.msra.mxu0 %v2977_v57 }
 0x6a6   :  { %803 = vrot.lane.b32.xlu0 %v214_v62, %s3543_s24 }
 0x6a8   :  { %813 = vrot.lane.b32.xlu1 %v219_v5, %s3543_s24 }
 0x6aa   :  { %807 = vrot.lane.b32.xlu0 %v216_v8, %s3543_s24 }
 0x6ae   :  { %811 = vrot.lane.b32.xlu0 %v218_v9, %s3543_s24 }
 0x718   :  { %v699_v11 = vpop.xlane.xlu1 %698 }
 0x719   :  { %v701_v12 = vsub.f32 %v691_v40, %v699_v11  ;;  %v696_v13 = vpop.xlane.xlu0 %695 }
 0x71a   :  { %v700_v14 = vsub.f32 %v686_v44, %v696_v13 }
 0x71b   :  { %v704_v16 = vmul.f32 1.442695, %v701_v12 }
 0x71c   :  { %v702_v17 = vmul.f32 1.442695, %v700_v14  ;;  %v4049_v18 = vpop.permute.xlu1 %801 }
 0x71d   :  { %v824_v21 = vmul.f32 %v4049_v18, %v3851_v41  ;;  %v4053_v22 = vpop.permute.xlu0 %799 }
 0x71e   :  { %3210 = vpow2.f32 %v702_v17  ;;  %v823_v23 = vmul.f32 %v4053_v22, %v3853_v43 }
 0x71f   :  { %3212 = vpow2.f32 %v704_v16 }
 0x720   :  { %v3158_v26 = vpack.i.bf16 %v824_v21, %v823_v23  ;;  %v4057_v27 = vpop.permute.xlu1 %805 }
 0x721   :  { %v826_v28 = vmul.f32 %v4057_v27, %v3851_v41  ;;  %v4061_v29 = vpop.permute.xlu0 %803 }
 0x722   :  { %v825_v30 = vmul.f32 %v4061_v29, %v3853_v43  ;;  %3159 = vrot.lane.b32.xlu0 %v3158_v26, %s3543_s24 }
 0x724   :  { %v3163_v31 = vpack.i.bf16 %v826_v28, %v825_v30  ;;  %v4066_v32 = vpop.permute.xlu1 %809 }
 0x725   :  { %v828_v33 = vmul.f32 %v4066_v32, %v3851_v41  ;;  %v4070_v34 = vpop.permute.xlu0 %807 }
 0x726   :  { %v827_v35 = vmul.f32 %v4070_v34, %v3853_v43  ;;  %3164 = vrot.lane.b32.xlu1 %v3163_v31, %s3543_s24 }
 0x728   :  { %v3211_v36 = vpop.eup %3210  ;;  %v3168_v39 = vpack.i.bf16 %v828_v33, %v827_v35  ;;  %v4075_v40 = vpop.permute.xlu1 %813  ;;  %v247_v35 = vld [vmem:[%s4482_s2 + $0x88] sm:$0xff] }
 0x729   :  { %v3213_v42 = vpop.eup %3212  ;;  %v830_v44 = vmul.f32 %v4075_v40, %v3851_v41  ;;  %2686 = vmatprep.mubr.msk.f32.mxu1 %vm588_vm1, %v3211_v36  ;;  %v4080_v45 = vpop.permute.xlu0 %811 }
 0x72a   :  { %v829_v46 = vmul.f32 %v4080_v45, %v3853_v43  ;;  %2687 = vmatmul.mubr.msk.f32.vlgmr.msra.gmra.mrb[2].mxu1 %vm588_vm1, %v3213_v42  ;;  %3169 = vrot.lane.b32.xlu0 %v3168_v39, %s3543_s24  ;;  %v246_v39 = vld [vmem:[%s4482_s2 + $0x80] sm:$0xff] }
 0x72c   :  { %v3173_v47 = vpack.i.bf16 %v830_v44, %v829_v46 }
 0x72e   :  { %3174 = vrot.lane.b32.xlu1 %v3173_v47, %s3543_s24  ;;  %1041 = vrot.lane.b32.xlu0 %v246_v39, %s3541_s22  ;;  %v1123_v39 = vld [vmem:[#allocation14 + $0x10] sm:$0xff] }
 0x732   :  { %1043 = vrot.lane.b32.xlu1 %v247_v35, %s3541_s22  ;;  %v1122_v35 = vld [vmem:[#allocation14 + $0x8] sm:$0xff] }
 0x794   :  { %v3160_v58 = vpop.permute.xlu0 %3159 }
 0x795   :  { %v3162_v59 = vunpack.i.h.bf16 %v3160_v58  ;;  %v3161_v61 = vunpack.i.l.bf16 %v3160_v58 }
 0x797   :  { %v2957_v62 = vpack.c.bf16 %v3162_v59, %v3161_v61 }
 0x798   :  { %v3165_v63 = vpop.permute.xlu1 %3164 }
 0x799   :  { %v3167_v2 = vunpack.i.h.bf16 %v3165_v63  ;;  %v3166_v5 = vunpack.i.l.bf16 %v3165_v63  ;;  %2958 = vmatprep.subr.bf16.mxu1 %v2957_v62 }
 0x79a   :  { %2960 = vmatpush3.bf16.msra.mxu1 %v2957_v62 }
 0x79b   :  { %v2961_v8 = vpack.c.bf16 %v3167_v2, %v3166_v5 }
 0x79c   :  { %v3170_v9 = vpop.permute.xlu0 %3169 }
 0x79d   :  { %v3172_v11 = vunpack.i.h.bf16 %v3170_v9  ;;  %v3171_v12 = vunpack.i.l.bf16 %v3170_v9  ;;  %2962 = vmatprep.subr.bf16.mxu1 %v2961_v8 }
 0x79e   :  { %2964 = vmatpush3.bf16.msra.mxu1 %v2961_v8 }
 0x79f   :  { %v2965_v13 = vpack.c.bf16 %v3172_v11, %v3171_v12 }
 0x7a0   :  { %v3175_v14 = vpop.permute.xlu1 %3174  ;;  %v1042_v48 = vpop.permute.xlu0 %1041 }
 0x7a1   :  { %v3177_v16 = vunpack.i.h.bf16 %v3175_v14  ;;  %v3176_v17 = vunpack.i.l.bf16 %v3175_v14  ;;  %2966 = vmatprep.subr.bf16.mxu1 %v2965_v13 }
 0x7a2   :  { %2968 = vmatpush3.bf16.msra.mxu1 %v2965_v13 }
 0x7a3   :  { %v2969_v21 = vpack.c.bf16 %v3177_v16, %v3176_v17 }
 0x7a4   :  { %v1044_v47 = vpop.permute.xlu1 %1043 }
 0x7a5   :  { %2970 = vmatprep.subr.bf16.mxu1 %v2969_v21 }
 0x7a6   :  { %2972 = vmatpush3.bf16.msra.mxu1 %v2969_v21 }
 0x7fd   :  { %v2688_v23 = vpop.f32.mrb[2].mxu1 }
 0x7fe   :  { %3214 = vrcp.f32 %v2688_v23  ;;  %v778_v26 = vpop.f32.mrb[3].mxu1 }
 0x7ff   :  { %3216 = vrcp.f32 %v778_v26  ;;  %v243_v26 = vld [vmem:[%s4482_s2 + $0x68] sm:$0xff] }
 0x808   :  { %v3215_v28 = vpop.eup %3214 }
 0x809   :  { %v3217_v30 = vpop.eup %3216  ;;  %v790_v33 = vmul.f32 %v3215_v28, %v3213_v42  ;;  %v245_v28 = vld [vmem:[%s4482_s2 + $0x78] sm:$0xff] }
 0x80a   :  { %v788_v31 = vmul.f32 %v3217_v30, %v3211_v36  ;;  %v242_v30 = vld [vmem:[%s4482_s2 + $0x60] sm:$0xff] }
 0x80c   :  { %2705 = vmatprep.mubr.msk.f32.mxu1 %vm588_vm1, %v788_v31  ;;  %v244_v31 = vld [vmem:[%s4482_s2 + $0x70] sm:$0xff] }
 0x80d   :  { %2706 = vmatmul.mubr.msk.f32.vlgmr.msra.gmra.mrb[4].mxu1 %vm588_vm1, %v790_v33  ;;  %v1121_v33 = vld [vmem:[#allocation14] sm:$0xff] }
 0x8e0   :  { %v2707_v44 = vpop.f32.mrb[4].mxu1 }
 0x8e1   :  { %v935_v46 = vpop.f32.mrb[5].mxu1 }
 0x8e2   :  { %2716 = vmatprep.mubr.msk.f32.mxu0 %vm256_vm0, %v935_v46  ;;  %v1124_v46 = vld [vmem:[#allocation14 + $0x18] sm:$0xff] }
 0x8e3   :  { %2717 = vmatmul.mubr.msk.f32.vlgmr.msra.gmra.mrb[4].mxu0 %vm256_vm0, %v2707_v44  ;;  %v2981_v44 = vpack.c.bf16 %v1122_v35, %v1121_v33  ;;  %v1221_v33 = vld [vmem:[%s4489_s9 + $0x48] sm:$0xff] }
 0x8e5   :  { %2982 = vmatprep.subr.bf16.mxu1 %v2981_v44 }
 0x8e6   :  { %2984 = vmatpush3.bf16.msra.mxu1 %v2981_v44  ;;  %v1223_v44 = vld [vmem:[%s4489_s9 + $0x58] sm:$0xff] }
 0x9b6   :  { %v2718_v36 = vpop.f32.mrb[4].mxu0 }
 0x9b7   :  { %1033 = vrot.lane.b32.xlu1 %v2718_v36, %s3541_s22  ;;  %v1020_v42 = vpop.f32.mrb[5].mxu0  ;;  %v2985_v36 = vpack.c.bf16 %v1124_v46, %v1123_v39  ;;  %v1222_v39 = vld [vmem:[%s4489_s9 + $0x50] sm:$0xff] }
 0x9b8   :  { %1031 = vrot.lane.b32.xlu0 %v1020_v42, %s3541_s22  ;;  %v3009_v46 = vpack.c.bf16 %v1223_v44, %v1222_v39  ;;  %v1365_v39 = vld [vmem:[#allocation10 + $0x20] sm:$0xff]  ;;  %v1366_v44 = vld [vmem:[#allocation10 + $0x28] sm:$0xff] }
 0x9b9   :  { %2986 = vmatprep.subr.bf16.mxu1 %v2985_v36 }
 0x9ba   :  { %2988 = vmatpush3.bf16.msra.mxu1 %v2985_v36  ;;  %v1224_v36 = vld [vmem:[%s4489_s9 + $0x60] sm:$0xff] }
 0x9bb   :  { %1053 = vrot.lane.b32.xlu1 %v3827_v1, %s3541_s22 }
 0x9bc   :  { %1051 = vrot.lane.b32.xlu0 %v3825_v0, %s3541_s22 }
 0xa29   :  { %v1034_v50 = vpop.permute.xlu1 %1033 }
 0xa2a   :  { %v1038_v51 = vadd.f32 %v1034_v50, %v3851_v41  ;;  %v1032_v52 = vpop.permute.xlu0 %1031 }
 0xa2b   :  { %v1037_v56 = vadd.f32 %v1032_v52, %v3853_v43 }
 0xa2c   :  { %v1048_v57 = vadd.f32 %v1044_v47, %v1038_v51 }
 0xa2d   :  { %v1054_v58 = vpop.permute.xlu1 %1053  ;;  %v1047_v59 = vadd.f32 %v1042_v48, %v1037_v56 }
 0xa2e   :  { %v1058_v61 = vadd.f32 %v1054_v58, %v1048_v57  ;;  %v1052_v62 = vpop.permute.xlu0 %1051  ;;  %v1212_v57 = vld [vmem:[%s4489_s9] sm:$0xff]  ;;  %v1213_v58 = vld [vmem:[%s4489_s9 + $0x8] sm:$0xff] }
 0xa2f   :  { %v1057_v63 = vadd.f32 %v1052_v62, %v1047_v59  ;;  %v1214_v59 = vld [vmem:[%s4489_s9 + $0x10] sm:$0xff]  ;;  %v2989_v62 = vpack.c.bf16 %v1213_v58, %v1212_v57  ;;  %v253_v57 = vld [vmem:[#allocation8 + $0x18] sm:$0xff] }
 0xa30   :  { %1063 = vrot.lane.b32.xlu1 %v1058_v61, %s3542_s25  ;;  %v252_v58 = vld [vmem:[#allocation8 + $0x10] sm:$0xff] }
 0xa31   :  { %1061 = vrot.lane.b32.xlu0 %v1057_v63, %s3542_s25  ;;  %2990 = vmatprep.subr.bf16.mxu0 %v2989_v62 }
 0xa32   :  { %2992 = vmatpush3.bf16.msra.mxu0 %v2989_v62 }
 0xaa2   :  { %v4109_v1 = vpop.permute.xlu1 %1063 }
 0xaa3   :  { %v4111_v0 = vpop.permute.xlu0 %1061  ;;  %v1070_v41 = vsel %vm256_vm0, %v4109_v1, 0.0 }
 0xaa4   :  { %1071 = vadd.xlane.f32.xlu1 %v1070_v41  ;;  %v1067_v43 = vsel %vm256_vm0, %v4111_v0, 0.0 }
 0xaa5   :  { %1068 = vadd.xlane.f32.xlu0 %v1067_v43  ;;  %v1216_v43 = vld [vmem:[%s4489_s9 + $0x20] sm:$0xff] }
 0xb31   :  { %v1072_v2 = vpop.xlane.xlu1 %1071 }
 0xb32   :  { %v1074_v5 = vmul.f32 0.03125, %v1072_v2  ;;  %v1069_v8 = vpop.xlane.xlu0 %1068  ;;  %v1217_v2 = vld [vmem:[%s4489_s9 + $0x28] sm:$0xff] }
 0xb33   :  { %v1073_v9 = vmul.f32 0.03125, %v1069_v8 }
 0xb34   :  { %v1076_v11 = vsub.f32 %v1058_v61, %v1074_v5 }
 0xb35   :  { %v1075_v12 = vsub.f32 %v1057_v63, %v1073_v9  ;;  %v1215_v63 = vld [vmem:[%s4489_s9 + $0x18] sm:$0xff] }
 0xb36   :  { %v1078_v13 = vmul.f32 %v1076_v11, %v1076_v11  ;;  %v2993_v41 = vpack.c.bf16 %v1215_v63, %v1214_v59 }
 0xb37   :  { %v1077_v14 = vmul.f32 %v1075_v12, %v1075_v12 }
 0xb38   :  { %1083 = vrot.lane.b32.xlu1 %v1078_v13, %s3542_s25  ;;  %2994 = vmatprep.subr.bf16.mxu0 %v2993_v41  ;;  %v2997_v13 = vpack.c.bf16 %v1217_v2, %v1216_v43  ;;  %v249_v2 = vld [vmem:[%s4482_s2 + $0x98] sm:$0xff] }
 0xb39   :  { %1081 = vrot.lane.b32.xlu0 %v1077_v14, %s3542_s25  ;;  %2996 = vmatpush3.bf16.msra.mxu0 %v2993_v41 }
 0xb3a   :  { %2998 = vmatprep.subr.bf16.mxu0 %v2997_v13 }
 0xb3d   :  { %3000 = vmatpush3.bf16.msra.mxu0 %v2997_v13 }
 0xbaa   :  { %v1084_v16 = vpop.permute.xlu1 %1083 }
 0xbab   :  { %v1082_v17 = vpop.permute.xlu0 %1081  ;;  %v1090_v21 = vsel %vm256_vm0, %v1084_v16, 0.0 }
 0xbac   :  { %1091 = vadd.xlane.f32.xlu1 %v1090_v21  ;;  %v1087_v23 = vsel %vm256_vm0, %v1082_v17, 0.0  ;;  %v1218_v17 = vld [vmem:[%s4489_s9 + $0x30] sm:$0xff]  ;;  %v1219_v21 = vld [vmem:[%s4489_s9 + $0x38] sm:$0xff] }
 0xbad   :  { %1088 = vadd.xlane.f32.xlu0 %v1087_v23 }
 0xbbd   :  { %1105 = vrot.lane.b32.xlu1 %v243_v26, %s3541_s22 }
 0xbc1   :  { %1115 = vrot.lane.b32.xlu1 %v245_v28, %s3541_s22 }
 0xbc3   :  { %1103 = vrot.lane.b32.xlu0 %v242_v30, %s3541_s22 }
 0xbc7   :  { %1113 = vrot.lane.b32.xlu0 %v244_v31, %s3541_s22  ;;  %v3001_v31 = vpack.c.bf16 %v1219_v21, %v1218_v17 }
 0xbc9   :  { %3002 = vmatprep.subr.bf16.mxu0 %v3001_v31 }
 0xbca   :  { %3004 = vmatpush3.bf16.msra.mxu0 %v3001_v31 }
 0xc39   :  { %v1092_v42 = vpop.xlane.xlu1 %1091 }
 0xc3a   :  { %v1094_v47 = vmul.f32 0.03125, %v1092_v42  ;;  %v1089_v48 = vpop.xlane.xlu0 %1088  ;;  %v1225_v42 = vld [vmem:[%s4489_s9 + $0x68] sm:$0xff] }
 0xc3b   :  { %v1093_v50 = vmul.f32 0.03125, %v1089_v48 }
 0xc3c   :  { %v1096_v51 = vadd.f32 1e-06, %v1094_v47  ;;  %v3013_v47 = vpack.c.bf16 %v1225_v42, %v1224_v36  ;;  %v1367_v36 = vld [vmem:[#allocation10 + $0x30] sm:$0xff]  ;;  %v1368_v42 = vld [vmem:[#allocation10 + $0x38] sm:$0xff] }
 0xc3d   :  { %v1095_v52 = vadd.f32 1e-06, %v1093_v50  ;;  %v1106_v56 = vpop.permute.xlu1 %1105 }
 0xc3e   :  { %3218 = vrsqrt.f32 %v1096_v51  ;;  %v1104_v61 = vpop.permute.xlu0 %1103  ;;  %v1226_v51 = vld [vmem:[%s4489_s9 + $0x70] sm:$0xff] }
 0xc3f   :  { %3220 = vrsqrt.f32 %v1095_v52  ;;  %v1227_v52 = vld [vmem:[%s4489_s9 + $0x78] sm:$0xff] }
 0xc41   :  { %v1116_v16 = vpop.permute.xlu1 %1115 }
 0xc42   :  { %v1114_v26 = vpop.permute.xlu0 %1113 }
 0xc48   :  { %v3219_v5 = vpop.eup %3218 }
 0xc49   :  { %v3221_v8 = vpop.eup %3220  ;;  %v1100_v9 = vmul.f32 %v3219_v5, %v1076_v11  ;;  %v248_v5 = vld [vmem:[%s4482_s2 + $0x90] sm:$0xff] }
 0xc4a   :  { %v1099_v14 = vmul.f32 %v3221_v8, %v1075_v12  ;;  %v1220_v12 = vld [vmem:[%s4489_s9 + $0x40] sm:$0xff] }
 0xc4b   :  { %v1110_v23 = vmul.f32 %v1106_v56, %v1100_v9  ;;  %v3005_v35 = vpack.c.bf16 %v1221_v33, %v1220_v12  ;;  %v3017_v56 = vpack.c.bf16 %v1227_v52, %v1226_v51 }
 0xc4c   :  { %v1109_v28 = vmul.f32 %v1104_v61, %v1099_v14 }
 0xc4d   :  { %v1120_v30 = vadd.f32 %v1116_v16, %v1110_v23  ;;  %3006 = vmatprep.subr.bf16.mxu0 %v3005_v35 }
 0xc4e   :  { %v1119_v11 = vadd.f32 %v1114_v26, %v1109_v28  ;;  %3008 = vmatpush3.bf16.msra.mxu0 %v3005_v35 }
 0xc4f   :  { %1129 = vrot.lane.b32.xlu1 %v1120_v30, %s3542_s25  ;;  %3010 = vmatprep.subr.bf16.mxu0 %v3009_v46 }
 0xc50   :  { %1127 = vrot.lane.b32.xlu0 %v1119_v11, %s3542_s25 }
 0xc52   :  { %3012 = vmatpush3.bf16.msra.mxu0 %v3009_v46  ;;  %v3021_v46 = vpack.c.bf16 %v1366_v44, %v1365_v39  ;;  %v1546_v39 = vld [vmem:[#allocation11 + $0x38] sm:$0xff] }
 0xc53   :  { %3014 = vmatprep.subr.bf16.mxu0 %v3013_v47 }
 0xc54   :  { %3022 = vmatprep.subr.bf16.mxu1 %v3021_v46 }
 0xc56   :  { %3016 = vmatpush3.bf16.msra.mxu0 %v3013_v47  ;;  %v3025_v47 = vpack.c.bf16 %v1368_v42, %v1367_v36 }
 0xc57   :  { %3018 = vmatprep.subr.bf16.mxu0 %v3017_v56 }
 0xc5a   :  { %3020 = vmatpush3.bf16.msra.mxu0 %v3017_v56 }
 0xcc1   :  { %v1130_v50 = vpop.permute.xlu1 %1129 }
 0xcc2   :  { %v1128_v48 = vpop.permute.xlu0 %1127 }
 0xcc3   :  { %2727 = vmatprep.mubr.msk.f32.mxu1 %vm256_vm0, %v1128_v48 }
 0xcc4   :  { %2728 = vmatmul.mubr.msk.f32.vlgmr.msra.gmra.mrb[6].mxu1 %vm256_vm0, %v1130_v50 }
 0xcc5   :  { %3024 = vmatpush3.bf16.msra.mxu1 %v3021_v46 }
 0xcc6   :  { %3026 = vmatprep.subr.bf16.mxu1 %v3025_v47 }
 0xcc9   :  { %3028 = vmatpush3.bf16.msra.mxu1 %v3025_v47 }
 0xd97   :  { %v2729_v59 = vpop.f32.mrb[6].mxu1 }
 0xd98   :  { %v1207_v61 = vadd.f32 %v2729_v59, %v253_v57  ;;  %v1201_v62 = vpop.f32.mrb[7].mxu1  ;;  %v2427_v59 = vld [vmem:[%s4482_s2 + $0xa0] sm:$0xff] }
 0xd99   :  { %v1202_v63 = vadd.f32 %v1201_v62, %v252_v58  ;;  %v2429_v62 = vld [vmem:[%s4482_s2 + $0xb0] sm:$0xff] }
 0xd9a   :  { %v1211_v43 = vmax.f32 %v1207_v61, 0.0 }
 0xd9b   :  { %v1210_v41 = vmax.f32 %v1202_v63, 0.0 }
 0xd9d   :  { %2762 = vmatprep.mubr.f32.mxu0 %v1210_v41 }
 0xd9e   :  { %2763 = vmatmul.mubr.f32.vlgmr.msra.gmra.mrb[6].mxu0 %v1211_v43  ;;  %v2428_v43 = vld [vmem:[%s4482_s2 + $0xa8] sm:$0xff] }
 0xe71   :  { %v2764_v8 = vpop.f32.mrb[6].mxu0 }
 0xe72   :  { %v1300_v9 = vadd.f32 %v2764_v8, %v249_v2  ;;  %v1294_v13 = vpop.f32.mrb[7].mxu0  ;;  %v2430_v8 = vld [vmem:[%s4482_s2 + $0xb8] sm:$0xff] }
 0xe73   :  { %v1295_v14 = vadd.f32 %v1294_v13, %v248_v5 }
 0xe74   :  { %v4196_v16 = vadd.f32 %v1300_v9, %v4109_v1 }
 0xe75   :  { %v4199_v17 = vadd.f32 %v1295_v14, %v4111_v0  ;;  %v1328_v14 = vld [vmem:[#allocation8 + $0x28] sm:$0xff] }
 0xe76   :  { %v1337_v21 = vsel %vm256_vm0, %v4196_v16, 0.0 }
 0xe77   :  { %1338 = vadd.xlane.f32.xlu1 %v1337_v21  ;;  %v1334_v23 = vsel %vm256_vm0, %v4199_v17, 0.0  ;;  %v1327_v21 = vld [vmem:[#allocation8 + $0x20] sm:$0xff] }
 0xe78   :  { %1335 = vadd.xlane.f32.xlu0 %v1334_v23 }
 0xf04   :  { %v1339_v26 = vpop.xlane.xlu1 %1338 }
 0xf05   :  { %v1341_v28 = vmul.f32 0.03125, %v1339_v26  ;;  %v1336_v30 = vpop.xlane.xlu0 %1335 }
 0xf06   :  { %v1340_v31 = vmul.f32 0.03125, %v1336_v30 }
 0xf07   :  { %v1343_v11 = vsub.f32 %v4196_v16, %v1341_v28 }
 0xf08   :  { %v1342_v1 = vsub.f32 %v4199_v17, %v1340_v31 }
 0xf09   :  { %v1345_v33 = vmul.f32 %v1343_v11, %v1343_v11 }
 0xf0a   :  { %v1344_v12 = vmul.f32 %v1342_v1, %v1342_v1 }
 0xf0b   :  { %v1349_v35 = vsel %vm256_vm0, %v1345_v33, 0.0  ;;  %v1545_v33 = vld [vmem:[#allocation11 + $0x30] sm:$0xff] }
 0xf0c   :  { %v1346_v0 = vsel %vm256_vm0, %v1344_v12, 0.0  ;;  %v1543_v12 = vld [vmem:[#allocation11 + $0x20] sm:$0xff]  ;;  %v3033_v44 = vpack.c.bf16 %v1546_v39, %v1545_v33 }
 0xf0d   :  { %1347 = vadd.xlane.f32.xlu0 %v1346_v0  ;;  %v1544_v0 = vld [vmem:[#allocation11 + $0x28] sm:$0xff] }
 0xf11   :  { %1350 = vadd.xlane.f32.xlu0 %v1349_v35  ;;  %v3029_v35 = vpack.c.bf16 %v1544_v0, %v1543_v12 }
 0xf13   :  { %3030 = vmatprep.subr.bf16.mxu1 %v3029_v35 }
 0xf9a   :  { %v1348_v48 = vpop.xlane.xlu0 %1347 }
 0xf9b   :  { %v1352_v50 = vmul.f32 0.03125, %v1348_v48 }
 0xf9d   :  { %v1354_v51 = vadd.f32 1e-06, %v1352_v50 }
 0xf9e   :  { %v1351_v52 = vpop.xlane.xlu0 %1350 }
 0xf9f   :  { %3222 = vrsqrt.f32 %v1354_v51  ;;  %v1353_v56 = vmul.f32 0.03125, %v1351_v52 }
 0xfa1   :  { %v1355_v57 = vadd.f32 1e-06, %v1353_v56 }
 0xfa3   :  { %3224 = vrsqrt.f32 %v1355_v57  ;;  %v2435_v57 = vld [vmem:[%s4482_s2 + $0xe0] sm:$0xff] }
 0xfa9   :  { %v3223_v58 = vpop.eup %3222 }
 0xfaa   :  { %v1358_v61 = vmul.f32 %v3223_v58, %v1342_v1  ;;  %v2437_v58 = vld [vmem:[%s4482_s2 + $0xf0] sm:$0xff] }
 0xfac   :  { %v1360_v63 = vmul.f32 %v2427_v59, %v1358_v61 }
 0xfad   :  { %v3225_v41 = vpop.eup %3224 }
 0xfae   :  { %v1359_v2 = vmul.f32 %v3225_v41, %v1343_v11  ;;  %v1362_v5 = vadd.f32 %v2429_v62, %v1360_v63  ;;  %v2436_v41 = vld [vmem:[%s4482_s2 + $0xe8] sm:$0xff] }
 0xfb0   :  { %2773 = vmatprep.mubr.msk.f32.mxu1 %vm256_vm0, %v1362_v5  ;;  %v1361_v9 = vmul.f32 %v2428_v43, %v1359_v2  ;;  %v2438_v43 = vld [vmem:[%s4482_s2 + $0xf8] sm:$0xff] }
 0xfb2   :  { %v1363_v13 = vadd.f32 %v2430_v8, %v1361_v9 }
 0xfb4   :  { %2774 = vmatmul.mubr.msk.f32.vlgmr.msra.gmra.mrb[8].mxu1 %vm256_vm0, %v1363_v13 }
 0xfb5   :  { %2784 = vmatprep.mubr.msk.f32.mxu1 %vm256_vm0, %v3861_v53  ;;  %3032 = vmatpush3.bf16.msra.mxu1 %v3029_v35 }
 0xfb6   :  { %3034 = vmatprep.subr.bf16.mxu1 %v3033_v44 }
 0xfb9   :  { %3036 = vmatpush3.bf16.msra.mxu1 %v3033_v44 }
 0xfbc   :  { %2785 = vmatmul.mubr.msk.f32.vlgmr.msra.gmra.mrb[10].mxu1 %vm256_vm0, %v3865_v55 }
0x1087   :  { %v2775_v23 = vpop.f32.mrb[8].mxu1 }
0x1088   :  { %v4225_v26 = vadd.f32 %v2775_v23, %v1328_v14  ;;  %v1441_v28 = vpop.f32.mrb[9].mxu1 }
0x1089   :  { %v4227_v30 = vadd.f32 %v1441_v28, %v1327_v21 }
0x108a   :  { %1484 = vrot.lane.b32.xlu1 %v4225_v26, %s3541_s22  ;;  %v1453_v56 = vsel %vm256_vm0, %v4225_v26, 0.0 }
0x108b   :  { %1482 = vrot.lane.b32.xlu0 %v4227_v30, %s3541_s22  ;;  %v1450_v55 = vsel %vm256_vm0, %v4227_v30, 0.0 }
0x108f   :  { %v2786_v2 = vpop.f32.mrb[10].mxu1 }
0x1090   :  { %v1613_v5 = vpop.f32.mrb[11].mxu1 }
0x10fc   :  { %v1485_v31 = vpop.permute.xlu1 %1484 }
0x10fd   :  { %v1483_v11 = vpop.permute.xlu0 %1482  ;;  %v1491_v1 = vsel %vm256_vm0, %v1485_v31, 0.0 }
0x10fe   :  { %1492 = vadd.xlane.f32.xlu0 %v1491_v1  ;;  %v1488_v53 = vsel %vm256_vm0, %v1483_v11, 0.0 }
0x10ff   :  { %1489 = vadd.xlane.f32.xlu1 %v1488_v53 }
0x118b   :  { %v1493_v46 = vpop.xlane.xlu0 %1492 }
0x118c   :  { %v1495_v36 = vmul.f32 0.03125, %v1493_v46  ;;  %v1490_v42 = vpop.xlane.xlu1 %1489 }
0x118d   :  { %v1494_v47 = vmul.f32 0.03125, %v1490_v42 }
0x118e   :  { %v1497_v48 = vsub.f32 %v4225_v26, %v1495_v36 }
0x118f   :  { %v1496_v50 = vsub.f32 %v4227_v30, %v1494_v47 }
0x1190   :  { %v1499_v51 = vmul.f32 %v1497_v48, %v1497_v48 }
0x1191   :  { %v1498_v52 = vmul.f32 %v1496_v50, %v1496_v50 }
0x1192   :  { %1504 = vrot.lane.b32.xlu1 %v1499_v51, %s3541_s22 }
0x1193   :  { %1502 = vrot.lane.b32.xlu0 %v1498_v52, %s3541_s22 }
0x11b2   :  { %1454 = vadd.xlane.f32.xlu0 %v1453_v56 }
0x11b6   :  { %1451 = vadd.xlane.f32.xlu1 %v1450_v55 }
0x11c8   :  { %1524 = vrot.lane.b32.xlu0 %v2435_v57, %s3542_s25 }
0x11cc   :  { %1534 = vrot.lane.b32.xlu0 %v2437_v58, %s3542_s25 }
0x1204   :  { %v1505_v59 = vpop.permute.xlu1 %1504 }
0x1205   :  { %v1503_v61 = vpop.permute.xlu0 %1502  ;;  %v1511_v62 = vsel %vm256_vm0, %v1505_v59, 0.0 }
0x1206   :  { %1512 = vadd.xlane.f32.xlu1 %v1511_v62  ;;  %v1508_v63 = vsel %vm256_vm0, %v1503_v61, 0.0 }
0x1207   :  { %1509 = vadd.xlane.f32.xlu0 %v1508_v63 }
0x1217   :  { %1526 = vrot.lane.b32.xlu1 %v2436_v41, %s3542_s25 }
0x121d   :  { %1536 = vrot.lane.b32.xlu0 %v2438_v43, %s3542_s25 }
0x123f   :  { %v1455_v8 = vpop.xlane.xlu0 %1454 }
0x1240   :  { %v1457_v9 = vmul.f32 0.03125, %v1455_v8  ;;  %v2431_v8 = vld [vmem:[%s4482_s2 + $0xc0] sm:$0xff] }
0x1242   :  { %v1459_v13 = vsub.f32 %v4225_v26, %v1457_v9 }
0x1243   :  { %v1452_v14 = vpop.xlane.xlu1 %1451  ;;  %v1525_v53 = vpop.permute.xlu0 %1524 }
0x1244   :  { %v1456_v21 = vmul.f32 0.03125, %v1452_v14  ;;  %v1461_v23 = vmul.f32 %v1459_v13, %v1459_v13 }
0x1246   :  { %v1458_v28 = vsub.f32 %v4227_v30, %v1456_v21  ;;  %v1465_v31 = vsel %vm256_vm0, %v1461_v23, 0.0  ;;  %v2432_v21 = vld [vmem:[%s4482_s2 + $0xc8] sm:$0xff] }
0x1247   :  { %1466 = vadd.xlane.f32.xlu0 %v1465_v31  ;;  %v1535_v12 = vpop.permute.xlu0 %1534 }
0x1248   :  { %v1460_v11 = vmul.f32 %v1458_v28, %v1458_v28 }
0x124a   :  { %v1462_v1 = vsel %vm256_vm0, %v1460_v11, 0.0 }
0x124b   :  { %1463 = vadd.xlane.f32.xlu1 %v1462_v1  ;;  %v2434_v1 = vld [vmem:[%s4482_s2 + $0xd8] sm:$0xff] }
0x125c   :  { %1644 = vrot.lane.b32.xlu1 %v1613_v5, %s3542_s25 }
0x1293   :  { %v1513_v0 = vpop.xlane.xlu1 %1512 }
0x1294   :  { %v1515_v33 = vmul.f32 0.03125, %v1513_v0  ;;  %v1510_v35 = vpop.xlane.xlu0 %1509 }
0x1295   :  { %v1514_v39 = vmul.f32 0.03125, %v1510_v35 }
0x1296   :  { %v1517_v44 = vadd.f32 1e-06, %v1515_v33 }
0x1297   :  { %v1516_v46 = vadd.f32 1e-06, %v1514_v39  ;;  %v1527_v51 = vpop.permute.xlu1 %1526 }
0x1298   :  { %3226 = vrsqrt.f32 %v1517_v44  ;;  %v1537_v55 = vpop.permute.xlu0 %1536 }
0x1299   :  { %3228 = vrsqrt.f32 %v1516_v46 }
0x12a2   :  { %v3227_v36 = vpop.eup %3226 }
0x12a3   :  { %v3229_v42 = vpop.eup %3228  ;;  %v1521_v47 = vmul.f32 %v3227_v36, %v1497_v48 }
0x12a4   :  { %v1520_v52 = vmul.f32 %v3229_v42, %v1496_v50 }
0x12a5   :  { %v1531_v56 = vmul.f32 %v1527_v51, %v1521_v47 }
0x12a6   :  { %v1530_v57 = vmul.f32 %v1525_v53, %v1520_v52 }
0x12a7   :  { %v1541_v58 = vadd.f32 %v1537_v55, %v1531_v56 }
0x12a8   :  { %v1540_v59 = vadd.f32 %v1535_v12, %v1530_v57 }
0x12a9   :  { %1638 = vrot.lane.b32.xlu0 %v1541_v58, %s3541_s22 }
0x12aa   :  { %1636 = vrot.lane.b32.xlu1 %v1540_v59, %s3541_s22 }
0x12ae   :  { %1646 = vrot.lane.b32.xlu1 %v2786_v2, %s3542_s25  ;;  %v2433_v2 = vld [vmem:[%s4482_s2 + $0xd0] sm:$0xff] }
0x12d4   :  { %v1467_v61 = vpop.xlane.xlu0 %1466 }
0x12d5   :  { %v1469_v62 = vmul.f32 0.03125, %v1467_v61 }
0x12d7   :  { %v1471_v63 = vadd.f32 1e-06, %v1469_v62 }
0x12d8   :  { %v1464_v41 = vpop.xlane.xlu1 %1463 }
0x12d9   :  { %v1468_v43 = vmul.f32 0.03125, %v1464_v41  ;;  %3230 = vrsqrt.f32 %v1471_v63 }
0x12db   :  { %v1470_v48 = vadd.f32 1e-06, %v1468_v43  ;;  %v1863_v43 = vmul.f32 %v4225_v26, %v4049_v18 }
0x12dd   :  { %3232 = vrsqrt.f32 %v1470_v48 }
0x12e3   :  { %v3231_v50 = vpop.eup %3230 }
0x12e4   :  { %v1475_v14 = vmul.f32 %v3231_v50, %v1459_v13  ;;  %v1645_v13 = vpop.permute.xlu1 %1644 }
0x12e6   :  { %v1477_v11 = vmul.f32 %v2432_v21, %v1475_v14 }
0x12e7   :  { %v3233_v5 = vpop.eup %3232 }
0x12e8   :  { %v1474_v9 = vmul.f32 %v3233_v5, %v1458_v28  ;;  %v1479_v53 = vadd.f32 %v2434_v1, %v1477_v11 }
0x12ea   :  { %v1476_v23 = vmul.f32 %v2431_v8, %v1474_v9 }
0x12ec   :  { %v1478_v31 = vadd.f32 %v2433_v2, %v1476_v23 }
0x12ee   :  { %1624 = vrot.lane.b32.xlu1 %v1478_v31, %s3542_s25 }
0x12f2   :  { %1626 = vrot.lane.b32.xlu1 %v1479_v53, %s3542_s25 }
0x131b   :  { %v1639_v0 = vpop.permute.xlu0 %1638 }
0x131c   :  { %v1637_v28 = vpop.permute.xlu1 %1636 }
0x131d   :  { %v1650_v12 = vsel %vm256_vm0, %v1637_v28, %v1645_v13 }
0x131e   :  { %v1652_v39 = vmul.f32 %v1650_v12, %v3920_v4  ;;  %v1654_v36 = vmul.f32 %v1650_v12, %v3936_v10  ;;  %v1656_v4 = vmul.f32 %v1650_v12, %v3963_v20  ;;  %v1658_v10 = vmul.f32 %v1650_v12, %v3979_v25 }
0x1320   :  { %v1647_v33 = vpop.permute.xlu1 %1646 }
0x1321   :  { %v1651_v35 = vsel %vm256_vm0, %v1639_v0, %v1647_v33 }
0x1322   :  { %v1653_v44 = vmul.f32 %v1651_v35, %v3926_v6  ;;  %v1655_v46 = vmul.f32 %v1651_v35, %v3931_v7  ;;  %v1657_v51 = vmul.f32 %v1651_v35, %v3954_v19  ;;  %v1659_v7 = vmul.f32 %v1651_v35, %v3970_v24  ;;  %v1332_v19 = vld [vmem:[#allocation7 + $0x10] sm:$0xff]  ;;  %v1333_v24 = vld [vmem:[#allocation7 + $0x18] sm:$0xff] }
0x1324   :  { %v3037_v42 = vpack.c.bf16 %v1653_v44, %v1652_v39  ;;  %v3043_v47 = vpack.c.bf16 %v1655_v46, %v1654_v36  ;;  %v3049_v6 = vpack.c.bf16 %v1657_v51, %v1656_v4  ;;  %v3055_v52 = vpack.c.bf16 %v1659_v7, %v1658_v10  ;;  %v1984_v46 = vld [vmem:[#allocation13 + $0x20] sm:$0xff]  ;;  %v1985_v36 = vld [vmem:[#allocation13 + $0x28] sm:$0xff]  ;;  %v1987_v51 = vld [vmem:[#allocation13 + $0x38] sm:$0xff] }
0x1326   :  { %3039 = vmatprep.subr.msk.bf16.mxu1 %vm3944_vm2, %v3037_v42 }
0x1327   :  { %3042 = vmatpush3.bf16.xpose.msk.msra.mxu1 %vm3944_vm2, %v3037_v42  ;;  %v1986_v42 = vld [vmem:[#allocation13 + $0x30] sm:$0xff] }
0x1328   :  { %3045 = vmatprep.subr.msk.bf16.mxu1 %vm3944_vm2, %v3043_v47  ;;  %v3097_v4 = vpack.c.bf16 %v1987_v51, %v1986_v42  ;;  %v2472_v51 = vld [vmem:[%s4489_s9 + $0x98] sm:$0xff] }
0x132f   :  { %3048 = vmatpush3.bf16.xpose.msk.msra.mxu1 %vm3944_vm2, %v3043_v47  ;;  %v3093_v47 = vpack.c.bf16 %v1985_v36, %v1984_v46  ;;  %v2470_v46 = vld [vmem:[%s4489_s9 + $0x88] sm:$0xff]  ;;  %v2471_v36 = vld [vmem:[%s4489_s9 + $0x90] sm:$0xff] }
0x1330   :  { %3051 = vmatprep.subr.msk.bf16.mxu1 %vm3944_vm2, %v3049_v6 }
0x1337   :  { %3054 = vmatpush3.bf16.xpose.msk.msra.mxu1 %vm3944_vm2, %v3049_v6 }
0x1338   :  { %3057 = vmatprep.subr.msk.bf16.mxu1 %vm3944_vm2, %v3055_v52 }
0x133f   :  { %3060 = vmatpush3.bf16.xpose.msk.msra.mxu1 %vm3944_vm2, %v3055_v52 }
0x1340   :  { %3062 = vmatprep.subr.bf16.mxu1 %v4001_v49 }
0x1360   :  { %v1625_v20 = vpop.permute.xlu1 %1624 }
0x1361   :  { %v1630_v56 = vsel %vm256_vm0, %v1478_v31, %v1625_v20 }
0x1362   :  { %v1632_v55 = vadd.f32 %v1630_v56, %v1332_v19  ;;  %v2444_v56 = vld [vmem:[%s4482_s2 + $0x128] sm:$0xff] }
0x1364   :  { %2803 = vmatprep.mubr.msk.f32.mxu1 %vm588_vm1, %v1632_v55  ;;  %v1627_v25 = vpop.permute.xlu1 %1626  ;;  %v2443_v55 = vld [vmem:[%s4482_s2 + $0x120] sm:$0xff] }
0x1365   :  { %v1631_v57 = vsel %vm256_vm0, %v1479_v53, %v1627_v25 }
0x1366   :  { %v1633_v58 = vadd.f32 %v1631_v57, %v1333_v24 }
0x1368   :  { %2804 = vmatmul.mubr.msk.f32.vlgmr.msra.gmra.mrb[12].mxu1 %vm588_vm1, %v1633_v58 }
0x1369   :  { %3064 = vmatpush3.bf16.msra.mxu1 %v4001_v49 }
0x136a   :  { %3066 = vmatprep.subr.bf16.mxu1 %v4009_v54 }
0x136d   :  { %3068 = vmatpush3.bf16.msra.mxu1 %v4009_v54  ;;  %v1864_v54 = vmul.f32 %v4227_v30, %v4061_v29 }
0x136e   :  { %3070 = vmatprep.subr.bf16.mxu1 %v4020_v60 }
0x1371   :  { %3072 = vmatpush3.bf16.msra.mxu1 %v4020_v60  ;;  %v1865_v60 = vmul.f32 %v4225_v26, %v4057_v27  ;;  %v1866_v27 = vmul.f32 %v4227_v30, %v4070_v34 }
0x1372   :  { %3074 = vmatprep.subr.bf16.mxu1 %v4032_v3 }
0x1373   :  { %v3183_v41 = vpack.i.bf16 %v1865_v60, %v1864_v54 }
0x1375   :  { %3076 = vmatpush3.bf16.msra.mxu1 %v4032_v3  ;;  %v1868_v3 = vmul.f32 %v4227_v30, %v4080_v45  ;;  %v1867_v45 = vmul.f32 %v4225_v26, %v4066_v32 }
0x1376   :  { %3094 = vmatprep.subr.bf16.mxu1 %v3093_v47 }
0x143b   :  { %v2805_v15 = vpop.f32.mrb[12].mxu1 }
0x143c   :  { %v1762_v59 = vadd.f32 %v2805_v15, %v3993_v37  ;;  %v1756_v61 = vpop.f32.mrb[13].mxu1  ;;  %v1869_v37 = vmul.f32 %v4225_v26, %v4075_v40  ;;  %v3188_v40 = vpack.i.bf16 %v1867_v45, %v1866_v27 }
0x143d   :  { %v1757_v62 = vadd.f32 %v1756_v61, %v3995_v38  ;;  %v1862_v38 = vmul.f32 %v4227_v30, %v4053_v22 }
0x143e   :  { %v1768_v49 = vsel %vm588_vm1, %v1762_v59, -inf  ;;  %v3193_v48 = vpack.i.bf16 %v1869_v37, %v1868_v3 }
0x143f   :  { %1769 = vmax.xlane.f32.xlu1 %v1768_v49  ;;  %v1765_v63 = vsel %vm588_vm1, %v1757_v62, -inf  ;;  %v3178_v29 = vpack.i.bf16 %v1863_v43, %v1862_v38 }
0x1440   :  { %1766 = vmax.xlane.f32.xlu0 %v1765_v63 }
0x1450   :  { %3184 = vrot.lane.b32.xlu1 %v3183_v41, %s3543_s24 }
0x1454   :  { %3194 = vrot.lane.b32.xlu1 %v3193_v48, %s3543_s24 }
0x1456   :  { %3179 = vrot.lane.b32.xlu0 %v3178_v29, %s3543_s24 }
0x1458   :  { %2083 = vrot.lane.b32.xlu1 %v2444_v56, %s3541_s22 }
0x145a   :  { %3189 = vrot.lane.b32.xlu0 %v3188_v40, %s3543_s24 }
0x145e   :  { %2081 = vrot.lane.b32.xlu0 %v2443_v55, %s3541_s22 }
0x14cc   :  { %v1770_v50 = vpop.xlane.xlu1 %1769 }
0x14cd   :  { %v1772_v22 = vsub.f32 %v1762_v59, %v1770_v50  ;;  %v1767_v5 = vpop.xlane.xlu0 %1766 }
0x14ce   :  { %v1771_v8 = vsub.f32 %v1757_v62, %v1767_v5 }
0x14cf   :  { %v1775_v18 = vmul.f32 1.442695, %v1772_v22 }
0x14d0   :  { %v1773_v9 = vmul.f32 1.442695, %v1771_v8  ;;  %v3185_v14 = vpop.permute.xlu1 %3184 }
0x14d1   :  { %v3187_v2 = vunpack.i.h.bf16 %v3185_v14  ;;  %v3180_v21 = vpop.permute.xlu0 %3179  ;;  %v3186_v23 = vunpack.i.l.bf16 %v3185_v14  ;;  %v2440_v14 = vld [vmem:[%s4482_s2 + $0x108] sm:$0xff] }
0x14d2   :  { %3234 = vpow2.f32 %v1773_v9  ;;  %v3182_v34 = vunpack.i.h.bf16 %v3180_v21  ;;  %v3181_v31 = vunpack.i.l.bf16 %v3180_v21  ;;  %v2439_v21 = vld [vmem:[%s4482_s2 + $0x100] sm:$0xff] }
0x14d3   :  { %3236 = vpow2.f32 %v1775_v18  ;;  %v3081_v1 = vpack.c.bf16 %v3187_v2, %v3186_v23  ;;  %v2442_v2 = vld [vmem:[%s4482_s2 + $0x118] sm:$0xff]  ;;  %v2441_v23 = vld [vmem:[%s4482_s2 + $0x110] sm:$0xff] }
0x14d4   :  { %v3077_v32 = vpack.c.bf16 %v3182_v34, %v3181_v31  ;;  %v3195_v28 = vpop.permute.xlu1 %3194  ;;  %v2162_v34 = vld [vmem:[#allocation14 + $0x20] sm:$0xff]  ;;  %v2163_v31 = vld [vmem:[#allocation14 + $0x28] sm:$0xff] }
0x14d5   :  { %v3190_v11 = vpop.permute.xlu0 %3189  ;;  %v3197_v12 = vunpack.i.h.bf16 %v3195_v28  ;;  %v3196_v0 = vunpack.i.l.bf16 %v3195_v28 }
0x14d6   :  { %v3192_v53 = vunpack.i.h.bf16 %v3190_v11  ;;  %v3191_v13 = vunpack.i.l.bf16 %v3190_v11  ;;  %3078 = vmatprep.subr.bf16.mxu0 %v3077_v32  ;;  %v3101_v11 = vpack.c.bf16 %v2163_v31, %v2162_v34 }
0x14d7   :  { %3080 = vmatpush3.bf16.msra.mxu0 %v3077_v32  ;;  %v3089_v44 = vpack.c.bf16 %v3197_v12, %v3196_v0  ;;  %v2164_v32 = vld [vmem:[#allocation14 + $0x30] sm:$0xff] }
0x14d8   :  { %3082 = vmatprep.subr.bf16.mxu0 %v3081_v1  ;;  %v3085_v33 = vpack.c.bf16 %v3192_v53, %v3191_v13  ;;  %v2084_v15 = vpop.permute.xlu1 %2083 }
0x14d9   :  { %v2082_v59 = vpop.permute.xlu0 %2081 }
0x14db   :  { %3084 = vmatpush3.bf16.msra.mxu0 %v3081_v1  ;;  %v2165_v1 = vld [vmem:[#allocation14 + $0x38] sm:$0xff] }
0x14dc   :  { %v3235_v35 = vpop.eup %3234  ;;  %3086 = vmatprep.subr.bf16.mxu0 %v3085_v33  ;;  %v3105_v53 = vpack.c.bf16 %v2165_v1, %v2164_v32 }
0x14dd   :  { %v3237_v39 = vpop.eup %3236  ;;  %2822 = vmatprep.mubr.msk.f32.mxu1 %vm588_vm1, %v3235_v35 }
0x14de   :  { %2823 = vmatmul.mubr.msk.f32.vlgmr.msra.gmra.mrb[14].mxu1 %vm588_vm1, %v3237_v39 }
0x14df   :  { %3088 = vmatpush3.bf16.msra.mxu0 %v3085_v33  ;;  %3096 = vmatpush3.bf16.msra.mxu1 %v3093_v47 }
0x14e0   :  { %3090 = vmatprep.subr.bf16.mxu0 %v3089_v44  ;;  %3098 = vmatprep.subr.bf16.mxu1 %v3097_v4 }
0x14e3   :  { %3092 = vmatpush3.bf16.msra.mxu0 %v3089_v44  ;;  %3100 = vmatpush3.bf16.msra.mxu1 %v3097_v4  ;;  %v2469_v44 = vld [vmem:[%s4489_s9 + $0x80] sm:$0xff]  ;;  %v3113_v4 = vpack.c.bf16 %v2472_v51, %v2471_v36 }
0x14e4   :  { %3102 = vmatprep.subr.bf16.mxu1 %v3101_v11  ;;  %v3109_v47 = vpack.c.bf16 %v2470_v46, %v2469_v44 }
0x14e6   :  { %3110 = vmatprep.subr.bf16.mxu0 %v3109_v47 }
0x15b1   :  { %v2824_v6 = vpop.f32.mrb[14].mxu1 }
0x15b2   :  { %3238 = vrcp.f32 %v2824_v6  ;;  %v1849_v7 = vpop.f32.mrb[15].mxu1  ;;  %v2473_v6 = vld [vmem:[%s4489_s9 + $0xa0] sm:$0xff] }
0x15b3   :  { %3240 = vrcp.f32 %v1849_v7  ;;  %v2474_v7 = vld [vmem:[%s4489_s9 + $0xa8] sm:$0xff] }
0x15bc   :  { %v3239_v10 = vpop.eup %3238 }
0x15bd   :  { %v3241_v52 = vpop.eup %3240  ;;  %v1861_v20 = vmul.f32 %v3239_v10, %v3237_v39 }
0x15be   :  { %v1859_v19 = vmul.f32 %v3241_v52, %v3235_v35 }
0x15c0   :  { %2841 = vmatprep.mubr.msk.f32.mxu0 %vm588_vm1, %v1859_v19 }
0x15c1   :  { %2842 = vmatmul.mubr.msk.f32.vlgmr.msra.gmra.mrb[8].mxu0 %vm588_vm1, %v1861_v20  ;;  %v3117_v20 = vpack.c.bf16 %v2474_v7, %v2473_v6  ;;  %v2347_v7 = vld [vmem:[#allocation16] sm:$0xff] }
0x15c2   :  { %3112 = vmatpush3.bf16.msra.mxu0 %v3109_v47 }
0x15c3   :  { %3114 = vmatprep.subr.bf16.mxu0 %v3113_v4 }
0x15c6   :  { %3116 = vmatpush3.bf16.msra.mxu0 %v3113_v4 }
0x15c7   :  { %3118 = vmatprep.subr.bf16.mxu0 %v3117_v20 }
0x15ca   :  { %3120 = vmatpush3.bf16.msra.mxu0 %v3117_v20 }
0x1694   :  { %v2843_v24 = vpop.f32.mrb[8].mxu0 }
0x1695   :  { %v1974_v25 = vpop.f32.mrb[9].mxu0 }
0x1696   :  { %2852 = vmatprep.mubr.msk.f32.mxu1 %vm256_vm0, %v1974_v25  ;;  %v2476_v25 = vld [vmem:[%s4489_s9 + $0xb8] sm:$0xff] }
0x1697   :  { %2853 = vmatmul.mubr.msk.f32.vlgmr.msra.gmra.mrb[16].mxu1 %vm256_vm0, %v2843_v24  ;;  %v2475_v24 = vld [vmem:[%s4489_s9 + $0xb0] sm:$0xff] }
0x1698   :  { %3104 = vmatpush3.bf16.msra.mxu1 %v3101_v11 }
0x1699   :  { %3106 = vmatprep.subr.bf16.mxu1 %v3105_v53 }
0x169c   :  { %3108 = vmatpush3.bf16.msra.mxu1 %v3105_v53 }
0x176a   :  { %v2854_v57 = vpop.f32.mrb[16].mxu1 }
0x176b   :  { %2073 = vrot.lane.b32.xlu1 %v2854_v57, %s3541_s22  ;;  %v2060_v58 = vpop.f32.mrb[17].mxu1 }
0x176c   :  { %2071 = vrot.lane.b32.xlu0 %v2060_v58, %s3541_s22 }
0x176f   :  { %2093 = vrot.lane.b32.xlu1 %v4196_v16, %s3541_s22 }
0x1770   :  { %2091 = vrot.lane.b32.xlu0 %v4199_v17, %s3541_s22 }
0x17dd   :  { %v2074_v61 = vpop.permute.xlu1 %2073 }
0x17de   :  { %v2078_v62 = vadd.f32 %v2074_v61, %v4225_v26  ;;  %v2072_v49 = vpop.permute.xlu0 %2071  ;;  %v3121_v61 = vpack.c.bf16 %v2476_v25, %v2475_v24  ;;  %v2350_v25 = vld [vmem:[#allocation16 + $0x18] sm:$0xff] }
0x17df   :  { %v2077_v63 = vadd.f32 %v2072_v49, %v4227_v30  ;;  %v2477_v49 = vld [vmem:[%s4489_s9 + $0xc0] sm:$0xff] }
0x17e0   :  { %v2088_v54 = vadd.f32 %v2084_v15, %v2078_v62  ;;  %3122 = vmatprep.subr.bf16.mxu0 %v3121_v61 }
0x17e1   :  { %v2094_v60 = vpop.permute.xlu1 %2093  ;;  %v2087_v41 = vadd.f32 %v2082_v59, %v2077_v63  ;;  %v2478_v63 = vld [vmem:[%s4489_s9 + $0xc8] sm:$0xff]  ;;  %3124 = vmatpush3.bf16.msra.mxu0 %v3121_v61 }
0x17e2   :  { %v2098_v3 = vadd.f32 %v2094_v60, %v2088_v54  ;;  %v2092_v37 = vpop.permute.xlu0 %2091  ;;  %v3125_v54 = vpack.c.bf16 %v2478_v63, %v2477_v49  ;;  %v2479_v60 = vld [vmem:[%s4489_s9 + $0xd0] sm:$0xff] }
0x17e3   :  { %v2097_v38 = vadd.f32 %v2092_v37, %v2087_v41  ;;  %v2480_v41 = vld [vmem:[%s4489_s9 + $0xd8] sm:$0xff]  ;;  %v2481_v37 = vld [vmem:[%s4489_s9 + $0xe0] sm:$0xff] }
0x17e4   :  { %2103 = vrot.lane.b32.xlu1 %v2098_v3, %s3542_s25  ;;  %3126 = vmatprep.subr.bf16.mxu0 %v3125_v54 }
0x17e5   :  { %2101 = vrot.lane.b32.xlu0 %v2097_v38, %s3542_s25  ;;  %3128 = vmatpush3.bf16.msra.mxu0 %v3125_v54 }
0x1856   :  { %v4371_v16 = vpop.permute.xlu1 %2103 }
0x1857   :  { %v4373_v17 = vpop.permute.xlu0 %2101  ;;  %v2110_v26 = vsel %vm256_vm0, %v4371_v16, 0.0 }
0x1858   :  { %2111 = vadd.xlane.f32.xlu1 %v2110_v26  ;;  %v2107_v30 = vsel %vm256_vm0, %v4373_v17, 0.0 }
0x1859   :  { %2108 = vadd.xlane.f32.xlu0 %v2107_v30 }
0x18e5   :  { %v2112_v43 = vpop.xlane.xlu1 %2111 }
0x18e6   :  { %v2114_v48 = vmul.f32 0.03125, %v2112_v43  ;;  %v2109_v29 = vpop.xlane.xlu0 %2108 }
0x18e7   :  { %v2113_v27 = vmul.f32 0.03125, %v2109_v29  ;;  %v2484_v29 = vld [vmem:[%s4489_s9 + $0xf8] sm:$0xff] }
0x18e8   :  { %v2116_v45 = vsub.f32 %v2098_v3, %v2114_v48  ;;  %v3129_v3 = vpack.c.bf16 %v2480_v41, %v2479_v60  ;;  %v2483_v48 = vld [vmem:[%s4489_s9 + $0xf0] sm:$0xff] }
0x18e9   :  { %v2115_v40 = vsub.f32 %v2097_v38, %v2113_v27  ;;  %v2482_v38 = vld [vmem:[%s4489_s9 + $0xe8] sm:$0xff]  ;;  %v3137_v27 = vpack.c.bf16 %v2484_v29, %v2483_v48 }
0x18ea   :  { %v2118_v50 = vmul.f32 %v2116_v45, %v2116_v45  ;;  %3130 = vmatprep.subr.bf16.mxu0 %v3129_v3  ;;  %v3133_v26 = vpack.c.bf16 %v2482_v38, %v2481_v37 }
0x18eb   :  { %v2117_v22 = vmul.f32 %v2115_v40, %v2115_v40  ;;  %3132 = vmatpush3.bf16.msra.mxu0 %v3129_v3 }
0x18ec   :  { %2123 = vrot.lane.b32.xlu1 %v2118_v50, %s3542_s25  ;;  %3134 = vmatprep.subr.bf16.mxu0 %v3133_v26 }
0x18ed   :  { %2121 = vrot.lane.b32.xlu0 %v2117_v22, %s3542_s25 }
0x18ef   :  { %3136 = vmatpush3.bf16.msra.mxu0 %v3133_v26 }
0x18f0   :  { %3138 = vmatprep.subr.bf16.mxu0 %v3137_v27 }
0x18f3   :  { %3140 = vmatpush3.bf16.msra.mxu0 %v3137_v27 }
0x195e   :  { %v2124_v5 = vpop.permute.xlu1 %2123 }
0x195f   :  { %v2130_v8 = vsel %vm256_vm0, %v2124_v5, 0.0  ;;  %v2122_v18 = vpop.permute.xlu0 %2121 }
0x1960   :  { %v2127_v9 = vsel %vm256_vm0, %v2122_v18, 0.0  ;;  %2131 = vadd.xlane.f32.xlu1 %v2130_v8 }
0x1961   :  { %2128 = vadd.xlane.f32.xlu0 %v2127_v9 }
0x1971   :  { %2145 = vrot.lane.b32.xlu1 %v2440_v14, %s3541_s22  ;;  %v2446_v14 = vld [vmem:[%s4482_s2 + $0x138] sm:$0xff] }
0x1975   :  { %2155 = vrot.lane.b32.xlu1 %v2442_v2, %s3541_s22  ;;  %v2445_v2 = vld [vmem:[%s4482_s2 + $0x130] sm:$0xff]  ;;  %s3544_s2 = smov [#allocation20]  }
0x1976   :  { %s2388_s9 = sshll.u32 %s3544_s2, 4  ;;  %s2389_s9 = int_to_ptr.vmem [resolvable:$true] %s2388_s9 }
0x1977   :  { %2143 = vrot.lane.b32.xlu0 %v2439_v21, %s3541_s22  ;;  %s3492_s12 = scalar_lea.vmem %s2389_s9, 256  ;;  %p3497_p5 = scmp.lt.s32.totalorder %s2389_s9, %s2389_s9 }
0x1978   :  { %p3493_p4 = scmp.ne.s32.totalorder %s2389_s9, %s3492_s12  ;;  %p3498_p6 = scmp.lt.s32.totalorder %s3492_s12, %s3492_s12 }
0x197a   :  { %p3499_p7 = por %p3498_p6, %p3497_p5 }
0x197b   :  { %2153 = vrot.lane.b32.xlu0 %v2441_v23, %s3541_s22 }
0x197c   :  { %p3500_p8 = pnand %p3499_p7, %p3493_p4 }
0x19ed   :  { %v2132_v13 = vpop.xlane.xlu1 %2131 }
0x19ee   :  { %v2134_v28 = vmul.f32 0.03125, %v2132_v13  ;;  %v2129_v12 = vpop.xlane.xlu0 %2128 }
0x19ef   :  { %v2133_v0 = vmul.f32 0.03125, %v2129_v12 }
0x19f0   :  { %v2136_v33 = vadd.f32 1e-06, %v2134_v28 }
0x19f1   :  { %v2135_v35 = vadd.f32 1e-06, %v2133_v0  ;;  %v2146_v39 = vpop.permute.xlu1 %2145 }
0x19f2   :  { %3242 = vrsqrt.f32 %v2136_v33  ;;  %v2144_v42 = vpop.permute.xlu0 %2143 }
0x19f3   :  { %3244 = vrsqrt.f32 %v2135_v35 }
0x19f5   :  { %v2156_v55 = vpop.permute.xlu1 %2155 }
0x19f6   :  { %v2154_v58 = vpop.permute.xlu0 %2153 }
0x19fc   :  { %v3243_v10 = vpop.eup %3242 }
0x19fd   :  { %v3245_v52 = vpop.eup %3244  ;;  %v2140_v19 = vmul.f32 %v3243_v10, %v2116_v45  ;;  %v1330_v45 = vld [vmem:[#allocation8 + $0x38] sm:$0xff] }
0x19fe   :  { %v2139_v56 = vmul.f32 %v3245_v52, %v2115_v40  ;;  %v1329_v40 = vld [vmem:[#allocation8 + $0x30] sm:$0xff] }
0x19ff   :  { %v2150_v57 = vmul.f32 %v2146_v39, %v2140_v19  ;;  %v2349_v52 = vld [vmem:[#allocation16 + $0x10] sm:$0xff] }
0x1a00   :  { %v2149_v15 = vmul.f32 %v2144_v42, %v2139_v56  ;;  %v2348_v56 = vld [vmem:[#allocation16 + $0x8] sm:$0xff] }
0x1a01   :  { %v2160_v59 = vadd.f32 %v2156_v55, %v2150_v57 }
0x1a02   :  { %v2159_v62 = vadd.f32 %v2154_v58, %v2149_v15 }
0x1a03   :  { %2170 = vrot.lane.b32.xlu1 %v2160_v59, %s3542_s25 }
0x1a04   :  { %2168 = vrot.lane.b32.xlu0 %v2159_v62, %s3542_s25 }
0x1a75   :  { %v2171_v43 = vpop.permute.xlu1 %2170 }
0x1a76   :  { %v2169_v30 = vpop.permute.xlu0 %2168 }
0x1a77   :  { %2863 = vmatprep.mubr.msk.f32.mxu1 %vm256_vm0, %v2169_v30 }
0x1a78   :  { %2864 = vmatmul.mubr.msk.f32.vlgmr.msra.gmra.mrb[18].mxu1 %vm256_vm0, %v2171_v43 }
0x1b4b   :  { %v2865_v50 = vpop.f32.mrb[18].mxu1 }
0x1b4c   :  { %v2248_v22 = vadd.f32 %v2865_v50, %v1330_v45  ;;  %v2242_v5 = vpop.f32.mrb[19].mxu1 }
0x1b4d   :  { %v2243_v8 = vadd.f32 %v2242_v5, %v1329_v40 }
0x1b4e   :  { %v2252_v9 = vmax.f32 %v2248_v22, 0.0 }
0x1b4f   :  { %v2251_v18 = vmax.f32 %v2243_v8, 0.0 }
0x1b51   :  { %2898 = vmatprep.mubr.f32.mxu0 %v2251_v18 }
0x1b52   :  { %2899 = vmatmul.mubr.f32.vlgmr.msra.gmra.mrb[10].mxu0 %v2252_v9 }
0x1c25   :  { %v2900_v21 = vpop.f32.mrb[10].mxu0 }
0x1c26   :  { %v2342_v23 = vadd.f32 %v2900_v21, %v2446_v14  ;;  %v2336_v34 = vpop.f32.mrb[11].mxu0 }
0x1c27   :  { %v2337_v31 = vadd.f32 %v2445_v2, %v2336_v34 }
0x1c28   :  { %v2346_v32 = vadd.f32 %v2342_v23, %v4371_v16 }
0x1c29   :  { %v2345_v11 = vadd.f32 %v2337_v31, %v4373_v17 }
0x1c2a   :  { %v2354_v1 = vsel %vm256_vm0, %v2346_v32, 0.0 }
0x1c2b   :  { %2355 = vadd.xlane.f32.xlu1 %v2354_v1  ;;  %v2351_v53 = vsel %vm256_vm0, %v2345_v11, 0.0 }
0x1c2c   :  { %2352 = vadd.xlane.f32.xlu0 %v2351_v53 }
0x1cb8   :  { %v2356_v13 = vpop.xlane.xlu1 %2355 }
0x1cb9   :  { %v2358_v28 = vmul.f32 0.03125, %v2356_v13  ;;  %v2353_v12 = vpop.xlane.xlu0 %2352 }
0x1cba   :  { %v2357_v0 = vmul.f32 0.03125, %v2353_v12 }
0x1cbb   :  { %v2360_v33 = vsub.f32 %v2346_v32, %v2358_v28 }
0x1cbc   :  { %v2359_v35 = vsub.f32 %v2345_v11, %v2357_v0 }
0x1cbd   :  { %v2362_v46 = vmul.f32 %v2360_v33, %v2360_v33 }
0x1cbe   :  { %v2361_v39 = vmul.f32 %v2359_v35, %v2359_v35 }
0x1cbf   :  { %v2366_v16 = vsel %vm256_vm0, %v2362_v46, 0.0 }
0x1cc0   :  { %v2363_v44 = vsel %vm256_vm0, %v2361_v39, 0.0 }
0x1cc1   :  { %2364 = vadd.xlane.f32.xlu0 %v2363_v44 }
0x1cc5   :  { %2367 = vadd.xlane.f32.xlu0 %v2366_v16 }
0x1d4e   :  { %v2365_v17 = vpop.xlane.xlu0 %2364 }
0x1d4f   :  { %v2369_v36 = vmul.f32 0.03125, %v2365_v17 }
0x1d51   :  { %v2371_v42 = vadd.f32 1e-06, %v2369_v36 }
0x1d52   :  { %v2368_v47 = vpop.xlane.xlu0 %2367 }
0x1d53   :  { %3246 = vrsqrt.f32 %v2371_v42  ;;  %v2370_v51 = vmul.f32 0.03125, %v2368_v47 }
0x1d55   :  { %v2372_v4 = vadd.f32 1e-06, %v2370_v51 }
0x1d57   :  { %3248 = vrsqrt.f32 %v2372_v4 }
0x1d5d   :  { %v3247_v6 = vpop.eup %3246 }
0x1d5e   :  { %v2375_v10 = vmul.f32 %v3247_v6, %v2359_v35 }
0x1d60   :  { %v2377_v19 = vmul.f32 %v2375_v10, %v2347_v7 }
0x1d61   :  { %v3249_v20 = vpop.eup %3248 }
0x1d62   :  { %v2376_v55 = vmul.f32 %v3249_v20, %v2360_v33  ;;  %v2379_v24 = vadd.f32 %v2377_v19, %v2349_v52 }
0x1d64   :  { %v2378_v57 = vmul.f32 %v2376_v55, %v2348_v56  ;;  %2381 = vst.msk [vmem:[#allocation20] sm:$0xff] %vm256_vm0, %v2379_v24 }
0x1d66   :  { %v2380_v58 = vadd.f32 %v2378_v57, %v2350_v25 }
0x1d68   :  { %2382 = vst.msk [vmem:[#allocation20 + $0x8] sm:$0xff] %vm256_vm0, %v2380_v58 }
0x1d69   :  { %3503 = shalt.err (!%p3500_p8)
}
0x1d6a   :  { %s3504_s24 = scalar_lea.hbm %s4495_s15, 256 }
0x1d6b   :  { %p3505_p9 = scmp.ne.s32.totalorder %s4495_s15, %s3504_s24  ;;  %p3508_p10 = scmp.lt.u32.totalorder %s3504_s24, %s4495_s15 }
0x1d6d   :  { %p3510_p11 = pnand %p3508_p10, %p3505_p9 }
0x1d6f   :  { %3513 = shalt.err (!%p3510_p11)
}
0x1d70   :  { %2394 = dma.vmem_to_hbm [thread:$0]  %s2389_s9, 256, %s4495_s15, [#allocation4], %s3530_s30, %s3530_s30, %s3531_s16  }
0x1d71   :  { %3526 = dma.done.wait [#allocation4], 256  }
0x1d72   :  { %3527 = vsyncadd [#allocation4], 4294967040 }
0x1d73   :  { %2398 = vsyncpa [#allocation3], 1 }
0x1d74   :  { %2399 = vsyncpa [#allocation6], 1 }
0x1d75   :  { %2400 = vsyncpa [#allocation9], 1 }
0x1d76   :  { %2401 = vsyncpa [#allocation12], 1 }
0x1d77   :  { %2402 = vsyncpa [#allocation15], 1 }
0x1d78   :  { %2403 = vsyncpa [#allocation18], 1 }
0x1d79   :  { %2404 = vsyncpa [#allocation4], 1 }

</bundles_post_ra>
